<compile_context>
chip_gen: v7x
topology: tpu7x:2x2x1
jax: 0.10.0
libtpu: 0.0.40
codegen_flags: <defaults>
</compile_context>

<pallas_src>
import functools

import jax
import jax.numpy as jnp
from jax import lax
from jax.experimental import pallas as pl
from jax.experimental.pallas import tpu as pltpu

EPS = 1e-5


# --------------------------------------------------------------------------------------
# Kernel 1 (used for both convs): 3x3x3 conv as 27 shifted matmuls + BN partial stats.
# --------------------------------------------------------------------------------------
def _conv3_stats_kernel(xm_ref, xz_ref, xp_ref, w_ref, mask_ref,
                        y_ref, sum_ref, ssq_ref, *, Wp, P, E):
    # xm/xz/xp: (1, Cin, 1, 1, Pe) bf16 -- padded-D rows d, d+1, d+2 of the zero-padded,
    #           (Hp*Wp)-flattened, lane-extended activation.
    # w_ref:    (27, Cout, Cin) bf16, resident (constant index_map).
    # mask_ref: (1, P) f32, 1.0 at interior (h, w) positions, 0.0 at spatial padding.
    # y_ref:    (1, 1, Cout, P) f32 raw conv output for this (n, d).
    # sum_ref/ssq_ref: (Cout, 1) f32, accumulated (masked) over the whole grid.
    @pl.when(jnp.logical_and(pl.program_id(0) == 0, pl.program_id(1) == 0))
    def _init():
        sum_ref[...] = jnp.zeros_like(sum_ref)
        ssq_ref[...] = jnp.zeros_like(ssq_ref)

    slabs = (xm_ref[0, :, 0, 0, :], xz_ref[0, :, 0, 0, :], xp_ref[0, :, 0, 0, :])
    cout = w_ref.shape[1]
    acc = jnp.zeros((cout, P), dtype=jnp.float32)
    for kd in range(3):
        slab = slabs[kd]                                   # (Cin, Pe) bf16
        for kh in range(3):
            for kw in range(3):
                k = (kd * 3 + kh) * 3 + kw
                base = E + (kh - 1) * Wp + (kw - 1)        # static lane offset
                s = slab[:, base:base + P]                 # (Cin, P) bf16, shifted window
                acc = acc + jnp.dot(w_ref[k], s, preferred_element_type=jnp.float32)

    y_ref[0, 0, :, :] = acc                                # lane-dense (Cout, P) store
    ym = acc * mask_ref[...]                               # exclude spatial padding
    sum_ref[...] += jnp.sum(ym, axis=1, keepdims=True)
    ssq_ref[...] += jnp.sum(ym * ym, axis=1, keepdims=True)


def _conv3_bn_stats(xext, w_k, mask, D, H, W):
    N, Cin, Dp, _, Pe = xext.shape
    Cout = w_k.shape[1]
    Hp, Wp = H + 2, W + 2
    P = Hp * Wp
    E = Wp + 1
    assert Pe == P + 2 * E

    kern = functools.partial(_conv3_stats_kernel, Wp=Wp, P=P, E=E)

    def slab_spec(off):
        return pl.BlockSpec((1, Cin, 1, 1, Pe),
                            lambda n, d, o=off: (n, 0, d + o, 0, 0))

    flops = 2 * N * D * P * 27 * Cin * Cout
    bytes_acc = (3 * N * Dp * Cin * Pe * 2        # bf16 activation slabs (3x overlap)
                 + N * D * Cout * P * 4           # f32 raw conv output
                 + 27 * Cout * Cin * 2)           # weights (once)

    y, s, q = pl.pallas_call(
        kern,
        grid=(N, D),
        in_specs=[slab_spec(0), slab_spec(1), slab_spec(2),
                  pl.BlockSpec((27, Cout, Cin), lambda n, d: (0, 0, 0)),
                  pl.BlockSpec((1, P), lambda n, d: (0, 0))],
        out_specs=[pl.BlockSpec((1, 1, Cout, P), lambda n, d: (n, d, 0, 0)),
                   pl.BlockSpec((Cout, 1), lambda n, d: (0, 0)),
                   pl.BlockSpec((Cout, 1), lambda n, d: (0, 0))],
        out_shape=[jax.ShapeDtypeStruct((N, D, Cout, P), jnp.float32),
                   jax.ShapeDtypeStruct((Cout, 1), jnp.float32),
                   jax.ShapeDtypeStruct((Cout, 1), jnp.float32)],
        # BN stats accumulate across the whole grid -> both axes must stay sequential.
        # (On v7x one would split the stats per-core to regain 2-TC parallelism.)
        compiler_params=pltpu.CompilerParams(
            dimension_semantics=("arbitrary", "arbitrary"),
            vmem_limit_bytes=32 * 1024 * 1024),
        cost_estimate=pl.CostEstimate(flops=flops, transcendentals=0,
                                      bytes_accessed=bytes_acc),
    )(xext, xext, xext, w_k, mask)
    return y, s, q


# --------------------------------------------------------------------------------------
# Kernel 2: apply BN1 (folded scale/shift) + PReLU, re-emit in the zero-padded,
#           lane-extended layout that feeds conv2 directly (bf16).
# --------------------------------------------------------------------------------------
def _bn_prelu_repad_kernel(y_ref, scale_ref, shift_ref, alpha_ref, mask_ref,
                           out_ref, *, P, E):
    dp = pl.program_id(1)
    ndp = pl.num_programs(1)
    out_ref[...] = jnp.zeros_like(out_ref)                 # zero padding everywhere

    @pl.when(jnp.logical_and(dp > 0, dp < ndp - 1))
    def _interior():
        y = y_ref[0, 0, :, :]                              # (Cout, P) f32
        a = y * scale_ref[...] + shift_ref[...]            # BN (batch stats, folded)
        a = jnp.where(a > 0, a, alpha_ref[...] * a)        # PReLU
        a = a * mask_ref[...]                              # keep spatial padding exactly 0
        out_ref[0, :, 0, 0, E:E + P] = a.astype(out_ref.dtype)


def _bn_prelu_repad(y, scale, shift, alpha, mask, E):
    N, D, Cout, P = y.shape
    Dp = D + 2
    Pe = P + 2 * E
    kern = functools.partial(_bn_prelu_repad_kernel, P=P, E=E)
    return pl.pallas_call(
        kern,
        grid=(N, Dp),
        in_specs=[pl.BlockSpec((1, 1, Cout, P),
                               lambda n, dp: (n, jnp.clip(dp - 1, 0, D - 1), 0, 0)),
                  pl.BlockSpec((Cout, 1), lambda n, dp: (0, 0)),
                  pl.BlockSpec((Cout, 1), lambda n, dp: (0, 0)),
                  pl.BlockSpec((1, 1), lambda n, dp: (0, 0)),
                  pl.BlockSpec((1, P), lambda n, dp: (0, 0))],
        out_specs=pl.BlockSpec((1, Cout, 1, 1, Pe), lambda n, dp: (n, 0, dp, 0, 0)),
        out_shape=jax.ShapeDtypeStruct((N, Cout, Dp, 1, Pe), jnp.bfloat16),
        compiler_params=pltpu.CompilerParams(
            dimension_semantics=("parallel", "arbitrary"),
            vmem_limit_bytes=32 * 1024 * 1024),
    )(y, scale, shift, alpha, mask)


# --------------------------------------------------------------------------------------
# Kernel 3: apply BN2 (folded scale/shift) + residual add (f32).
# --------------------------------------------------------------------------------------
def _bn_residual_kernel(y_ref, x_ref, scale_ref, shift_ref, out_ref):
    y = y_ref[0, 0, :, :]                                  # (Cout, P) f32 raw conv2
    x0 = x_ref[0, :, 0, 0, :]                              # (Cin, P)  f32 residual
    out_ref[0, :, 0, 0, :] = x0 + y * scale_ref[...] + shift_ref[...]


def _bn_residual(y, x0flat, scale, shift):
    N, D, Cout, P = y.shape
    Cin = x0flat.shape[1]
    return pl.pallas_call(
        _bn_residual_kernel,
        grid=(N, D),
        in_specs=[pl.BlockSpec((1, 1, Cout, P), lambda n, d: (n, d, 0, 0)),
                  pl.BlockSpec((1, Cin, 1, 1, P), lambda n, d: (n, 0, d, 0, 0)),
                  pl.BlockSpec((Cout, 1), lambda n, d: (0, 0)),
                  pl.BlockSpec((Cout, 1), lambda n, d: (0, 0))],
        out_specs=pl.BlockSpec((1, Cout, 1, 1, P), lambda n, d: (n, 0, d, 0, 0)),
        out_shape=jax.ShapeDtypeStruct((N, Cout, D, 1, P), jnp.float32),
        compiler_params=pltpu.CompilerParams(
            dimension_semantics=("parallel", "arbitrary"),
            vmem_limit_bytes=32 * 1024 * 1024),
    )(y, x0flat, scale, shift)


# --------------------------------------------------------------------------------------
# Wrapper: full Residual_Block forward (training-mode BatchNorm batch statistics).
# --------------------------------------------------------------------------------------
def residual_block_pallas(x_ncdhw, params):
    w1, g1, b1, alpha, w2, g2, b2 = params
    x = x_ncdhw.astype(jnp.float32)
    N, Cin, D, H, W = x.shape
    Cout = w1.shape[-1]
    assert Cin == Cout, "residual add requires input_channel == output_channel"
    Dp, Hp, Wp = D + 2, H + 2, W + 2
    P = Hp * Wp                     # flattened padded spatial plane (lane dimension)
    E = Wp + 1                      # lane extension so every 3x3 shift is a static slice
    cnt = N * D * H * W             # BN normalization count (global batch statistics)

    # Spatial validity mask over the flattened padded plane (resident VMEM input).
    mask = jnp.zeros((Hp, Wp), jnp.float32).at[1:1 + H, 1:1 + W].set(1.0).reshape(1, P)

    # Zero-padded, flattened, lane-extended conv input (bf16 for MXU + halved DMA bytes).
    xpad = jnp.pad(x, ((0, 0), (0, 0), (1, 1), (1, 1), (1, 1)))       # (N,C,Dp,Hp,Wp) f32
    xflat = xpad.reshape(N, Cin, Dp, 1, P)
    xext = jnp.pad(xflat, ((0, 0), (0, 0), (0, 0), (0, 0), (E, E))).astype(jnp.bfloat16)

    # Weights (kd,kh,kw,Cin,Cout) -> (27, Cout, Cin) bf16, tap-major.
    w1k = jnp.transpose(w1.reshape(27, Cin, Cout), (0, 2, 1)).astype(jnp.bfloat16)
    w2k = jnp.transpose(w2.reshape(27, Cout, Cout), (0, 2, 1)).astype(jnp.bfloat16)
    alpha_v = alpha.reshape(1, 1).astype(jnp.float32)

    # ---- conv1 + BN1 global batch stats (fused, accumulated across the grid) ----------
    y1, s1, q1 = _conv3_bn_stats(xext, w1k, mask, D, H, W)
    mean1 = s1 / cnt
    var1 = q1 / cnt - mean1 * mean1                       # biased var, f32
    inv1 = g1.reshape(Cout, 1) * lax.rsqrt(var1 + EPS)
    scale1, shift1 = inv1, b1.reshape(Cout, 1) - mean1 * inv1

    # ---- BN1 apply + PReLU, written directly in the conv2 input layout ----------------
    a1 = _bn_prelu_repad(y1, scale1, shift1, alpha_v, mask, E)

    # ---- conv2 + BN2 global batch stats ------------------------------------------------
    y2, s2, q2 = _conv3_bn_stats(a1, w2k, mask, D, H, W)
    mean2 = s2 / cnt
    var2 = q2 / cnt - mean2 * mean2
    inv2 = g2.reshape(Cout, 1) * lax.rsqrt(var2 + EPS)
    scale2, shift2 = inv2, b2.reshape(Cout, 1) - mean2 * inv2

    # ---- BN2 apply + residual add ------------------------------------------------------
    x0flat = xpad[:, :, 1:1 + D].reshape(N, Cin, D, 1, P)  # f32 residual, same positions
    outp = _bn_residual(y2, x0flat, scale2, shift2)        # (N, Cout, D, 1, P)

    # Strip the H/W padding columns; result is already NCDHW.
    out = outp.reshape(N, Cout, D, Hp, Wp)[:, :, :, 1:1 + H, 1:1 + W]
    return out


# --------------------------------------------------------------------------------------
# Pure-JAX reference (matches the PyTorch module in default training mode).
# --------------------------------------------------------------------------------------
def residual_block_ref(x_ncdhw, params):
    w1, g1, b1, alpha, w2, g2, b2 = params
    x = jnp.transpose(x_ncdhw, (0, 2, 3, 4, 1)).astype(jnp.float32)
    dn = ('NDHWC', 'DHWIO', 'NDHWC')

    def conv(v, w):
        return lax.conv_general_dilated(v, w, window_strides=(1, 1, 1),
                                        padding='SAME', dimension_numbers=dn)

    def bn(v, g, b):
        mean = v.mean(axis=(0, 1, 2, 3))
        var = v.var(axis=(0, 1, 2, 3))        # biased, like BN normalization
        return (v - mean) * lax.rsqrt(var + EPS) * g + b

    y = conv(x, w1)
    y = bn(y, g1, b1)
    y = jnp.where(y > 0, y, alpha * y)        # PReLU (single parameter)
    y = conv(y, w2)
    y = bn(y, g2, b2)
    out = x + y
    return jnp.transpose(out, (0, 4, 1, 2, 3))


if __name__ == "__main__":
    key = jax.random.PRNGKey(0)
    # Residual add implies input_channel == output_channel.
    N, C, D, H, W = 2, 4, 8, 16, 16
    k_x, k_w1, k_w2, k_g1, k_b1, k_g2, k_b2 = jax.random.split(key, 7)

    x = jax.random.normal(k_x, (N, C, D, H, W), dtype=jnp.float32)
    # Conv weights in (kd, kh, kw, Cin, Cout) layout (PyTorch [Cout,Cin,kd,kh,kw] permuted).
    w1 = jax.random.normal(k_w1, (3, 3, 3, C, C), dtype=jnp.float32) * 0.1
    w2 = jax.random.normal(k_w2, (3, 3, 3, C, C), dtype=jnp.float32) * 0.1
    g1 = 1.0 + 0.1 * jax.random.normal(k_g1, (C,), dtype=jnp.float32)
    b1 = 0.1 * jax.random.normal(k_b1, (C,), dtype=jnp.float32)
    g2 = 1.0 + 0.1 * jax.random.normal(k_g2, (C,), dtype=jnp.float32)
    b2 = 0.1 * jax.random.normal(k_b2, (C,), dtype=jnp.float32)
    alpha = jnp.array([0.25], dtype=jnp.float32)   # PReLU default init
    params = (w1, g1, b1, alpha, w2, g2, b2)

    fwd = jax.jit(residual_block_pallas)
    out = jax.block_until_ready(fwd(x, params))
    ref = jax.block_until_ready(residual_block_ref(x, params))

    assert out.shape == (N, C, D, H, W)
    max_err = float(jnp.abs(out - ref).max())
    # bf16 MXU operands (per perf review); stats / normalization / residual are f32.
    assert jnp.allclose(out, ref, atol=5e-2, rtol=5e-2), max_err
    print("KERNEL_OK")
</pallas_src>

<mosaic_0001>
module attributes {stable_mosaic.version = 11 : i64} {
  func.func @_conv3_stats_kernel(%arg0: i32, %arg1: i32, %arg2: memref<1x4x1x1x362xbf16, #tpu.memory_space<vmem>>, %arg3: memref<1x4x1x1x362xbf16, #tpu.memory_space<vmem>>, %arg4: memref<1x4x1x1x362xbf16, #tpu.memory_space<vmem>>, %arg5: memref<27x4x4xbf16, #tpu.memory_space<vmem>>, %arg6: memref<1x324xf32, #tpu.memory_space<vmem>>, %arg7: memref<1x1x4x324xf32, #tpu.memory_space<vmem>>, %arg8: memref<4x1xf32, #tpu.memory_space<vmem>>, %arg9: memref<4x1xf32, #tpu.memory_space<vmem>>) attributes {dimension_semantics = [#tpu.dimension_semantics<arbitrary>, #tpu.dimension_semantics<arbitrary>], iteration_bounds = array<i64: 2, 8>, scalar_prefetch = 0 : i64, scratch_operands = 0 : i64, tpu.core_type = #tpu.core_type<tc>, window_params = [{transform_indices = @transform_0, window_bounds = array<i64: 1, 4, 1, 1, 362>}, {transform_indices = @transform_1, window_bounds = array<i64: 1, 4, 1, 1, 362>}, {transform_indices = @transform_2, window_bounds = array<i64: 1, 4, 1, 1, 362>}, {pipeline_mode = #tpu.pipeline_mode<synchronous>, transform_indices = @transform_3, window_bounds = array<i64: 27, 4, 4>}, {pipeline_mode = #tpu.pipeline_mode<synchronous>, transform_indices = @transform_4, window_bounds = array<i64: 1, 324>}, {transform_indices = @transform_5, window_bounds = array<i64: 1, 1, 4, 324>}, {pipeline_mode = #tpu.pipeline_mode<synchronous>, transform_indices = @transform_6, window_bounds = array<i64: 4, 1>}, {pipeline_mode = #tpu.pipeline_mode<synchronous>, transform_indices = @transform_7, window_bounds = array<i64: 4, 1>}]} {
    %c0_i32 = arith.constant 0 : i32
    %0 = arith.cmpi eq, %arg0, %c0_i32 : i32
    %c0_i32_0 = arith.constant 0 : i32
    %1 = arith.cmpi eq, %arg1, %c0_i32_0 : i32
    %2 = arith.andi %0, %1 : i1
    %3 = arith.extui %2 : i1 to i32
    %c0_i32_1 = arith.constant 0 : i32
    %4 = arith.cmpi ne, %3, %c0_i32_1 : i32
    scf.if %4 {
      %cst_114 = arith.constant 0.000000e+00 : f32
      %164 = vector.broadcast %cst_114 : f32 to vector<4x1xf32>
      %c0_115 = arith.constant 0 : index
      %c0_116 = arith.constant 0 : index
      %165 = vector.load %arg8[%c0_115, %c0_116] : memref<4x1xf32, #tpu.memory_space<vmem>>, vector<4x1xf32>
      tpu.vector_store %arg8[%c0_115, %c0_116], %164 {strides = array<i32>} : memref<4x1xf32, #tpu.memory_space<vmem>>, vector<4x1xf32>,
      %cst_117 = arith.constant 0.000000e+00 : f32
      %166 = vector.broadcast %cst_117 : f32 to vector<4x1xf32>
      %c0_118 = arith.constant 0 : index
      %c0_119 = arith.constant 0 : index
      %167 = vector.load %arg9[%c0_118, %c0_119] : memref<4x1xf32, #tpu.memory_space<vmem>>, vector<4x1xf32>
      tpu.vector_store %arg9[%c0_118, %c0_119], %166 {strides = array<i32>} : memref<4x1xf32, #tpu.memory_space<vmem>>, vector<4x1xf32>,
    } else {
    }
    %c0 = arith.constant 0 : index
    %c0_2 = arith.constant 0 : index
    %c0_3 = arith.constant 0 : index
    %c0_4 = arith.constant 0 : index
    %c0_5 = arith.constant 0 : index
    %5 = vector.load %arg2[%c0, %c0_2, %c0_3, %c0_4, %c0_5] : memref<1x4x1x1x362xbf16, #tpu.memory_space<vmem>>, vector<1x4x1x1x362xbf16>
    %6 = vector.shape_cast %5 : vector<1x4x1x1x362xbf16> to vector<4x362xbf16>
    %c0_6 = arith.constant 0 : index
    %c0_7 = arith.constant 0 : index
    %c0_8 = arith.constant 0 : index
    %c0_9 = arith.constant 0 : index
    %c0_10 = arith.constant 0 : index
    %7 = vector.load %arg3[%c0_6, %c0_7, %c0_8, %c0_9, %c0_10] : memref<1x4x1x1x362xbf16, #tpu.memory_space<vmem>>, vector<1x4x1x1x362xbf16>
    %8 = vector.shape_cast %7 : vector<1x4x1x1x362xbf16> to vector<4x362xbf16>
    %c0_11 = arith.constant 0 : index
    %c0_12 = arith.constant 0 : index
    %c0_13 = arith.constant 0 : index
    %c0_14 = arith.constant 0 : index
    %c0_15 = arith.constant 0 : index
    %9 = vector.load %arg4[%c0_11, %c0_12, %c0_13, %c0_14, %c0_15] : memref<1x4x1x1x362xbf16, #tpu.memory_space<vmem>>, vector<1x4x1x1x362xbf16>
    %10 = vector.shape_cast %9 : vector<1x4x1x1x362xbf16> to vector<4x362xbf16>
    %cst = arith.constant 0.000000e+00 : f32
    %11 = vector.broadcast %cst : f32 to vector<4x324xf32>
    %12 = vector.extract_strided_slice %6 {offsets = [0, 0], sizes = [4, 324], strides = [1, 1]} : vector<4x362xbf16> to vector<4x324xbf16>
    %c0_16 = arith.constant 0 : index
    %c0_17 = arith.constant 0 : index
    %c0_18 = arith.constant 0 : index
    %13 = vector.load %arg5[%c0_16, %c0_17, %c0_18] : memref<27x4x4xbf16, #tpu.memory_space<vmem>>, vector<1x4x4xbf16>
    %14 = vector.shape_cast %13 : vector<1x4x4xbf16> to vector<4x4xbf16>
    %cst_19 = arith.constant dense<0.000000e+00> : vector<4x324xf32>
    %15 = tpu.matmul %14, %12, %cst_19 {dimension_numbers = #tpu.dot_dimension_numbers<[1], [0], [0], [1], [0, 0, 1, 1], [], []>} : vector<4x4xbf16>, vector<4x324xbf16>, vector<4x324xf32> -> vector<4x324xf32>
    %16 = arith.addf %11, %15 : vector<4x324xf32>
    %17 = vector.extract_strided_slice %6 {offsets = [0, 1], sizes = [4, 324], strides = [1, 1]} : vector<4x362xbf16> to vector<4x324xbf16>
    %c1 = arith.constant 1 : index
    %c0_20 = arith.constant 0 : index
    %c0_21 = arith.constant 0 : index
    %18 = vector.load %arg5[%c1, %c0_20, %c0_21] : memref<27x4x4xbf16, #tpu.memory_space<vmem>>, vector<1x4x4xbf16>
    %19 = vector.shape_cast %18 : vector<1x4x4xbf16> to vector<4x4xbf16>
    %cst_22 = arith.constant dense<0.000000e+00> : vector<4x324xf32>
    %20 = tpu.matmul %19, %17, %cst_22 {dimension_numbers = #tpu.dot_dimension_numbers<[1], [0], [0], [1], [0, 0, 1, 1], [], []>} : vector<4x4xbf16>, vector<4x324xbf16>, vector<4x324xf32> -> vector<4x324xf32>
    %21 = arith.addf %16, %20 : vector<4x324xf32>
    %22 = vector.extract_strided_slice %6 {offsets = [0, 2], sizes = [4, 324], strides = [1, 1]} : vector<4x362xbf16> to vector<4x324xbf16>
    %c2 = arith.constant 2 : index
    %c0_23 = arith.constant 0 : index
    %c0_24 = arith.constant 0 : index
    %23 = vector.load %arg5[%c2, %c0_23, %c0_24] : memref<27x4x4xbf16, #tpu.memory_space<vmem>>, vector<1x4x4xbf16>
    %24 = vector.shape_cast %23 : vector<1x4x4xbf16> to vector<4x4xbf16>
    %cst_25 = arith.constant dense<0.000000e+00> : vector<4x324xf32>
    %25 = tpu.matmul %24, %22, %cst_25 {dimension_numbers = #tpu.dot_dimension_numbers<[1], [0], [0], [1], [0, 0, 1, 1], [], []>} : vector<4x4xbf16>, vector<4x324xbf16>, vector<4x324xf32> -> vector<4x324xf32>
    %26 = arith.addf %21, %25 : vector<4x324xf32>
    %27 = vector.extract_strided_slice %6 {offsets = [0, 18], sizes = [4, 324], strides = [1, 1]} : vector<4x362xbf16> to vector<4x324xbf16>
    %c3 = arith.constant 3 : index
    %c0_26 = arith.constant 0 : index
    %c0_27 = arith.constant 0 : index
    %28 = vector.load %arg5[%c3, %c0_26, %c0_27] : memref<27x4x4xbf16, #tpu.memory_space<vmem>>, vector<1x4x4xbf16>
    %29 = vector.shape_cast %28 : vector<1x4x4xbf16> to vector<4x4xbf16>
    %cst_28 = arith.constant dense<0.000000e+00> : vector<4x324xf32>
    %30 = tpu.matmul %29, %27, %cst_28 {dimension_numbers = #tpu.dot_dimension_numbers<[1], [0], [0], [1], [0, 0, 1, 1], [], []>} : vector<4x4xbf16>, vector<4x324xbf16>, vector<4x324xf32> -> vector<4x324xf32>
    %31 = arith.addf %26, %30 : vector<4x324xf32>
    %32 = vector.extract_strided_slice %6 {offsets = [0, 19], sizes = [4, 324], strides = [1, 1]} : vector<4x362xbf16> to vector<4x324xbf16>
    %c4 = arith.constant 4 : index
    %c0_29 = arith.constant 0 : index
    %c0_30 = arith.constant 0 : index
    %33 = vector.load %arg5[%c4, %c0_29, %c0_30] : memref<27x4x4xbf16, #tpu.memory_space<vmem>>, vector<1x4x4xbf16>
    %34 = vector.shape_cast %33 : vector<1x4x4xbf16> to vector<4x4xbf16>
    %cst_31 = arith.constant dense<0.000000e+00> : vector<4x324xf32>
    %35 = tpu.matmul %34, %32, %cst_31 {dimension_numbers = #tpu.dot_dimension_numbers<[1], [0], [0], [1], [0, 0, 1, 1], [], []>} : vector<4x4xbf16>, vector<4x324xbf16>, vector<4x324xf32> -> vector<4x324xf32>
    %36 = arith.addf %31, %35 : vector<4x324xf32>
    %37 = vector.extract_strided_slice %6 {offsets = [0, 20], sizes = [4, 324], strides = [1, 1]} : vector<4x362xbf16> to vector<4x324xbf16>
    %c5 = arith.constant 5 : index
    %c0_32 = arith.constant 0 : index
    %c0_33 = arith.constant 0 : index
    %38 = vector.load %arg5[%c5, %c0_32, %c0_33] : memref<27x4x4xbf16, #tpu.memory_space<vmem>>, vector<1x4x4xbf16>
    %39 = vector.shape_cast %38 : vector<1x4x4xbf16> to vector<4x4xbf16>
    %cst_34 = arith.constant dense<0.000000e+00> : vector<4x324xf32>
    %40 = tpu.matmul %39, %37, %cst_34 {dimension_numbers = #tpu.dot_dimension_numbers<[1], [0], [0], [1], [0, 0, 1, 1], [], []>} : vector<4x4xbf16>, vector<4x324xbf16>, vector<4x324xf32> -> vector<4x324xf32>
    %41 = arith.addf %36, %40 : vector<4x324xf32>
    %42 = vector.extract_strided_slice %6 {offsets = [0, 36], sizes = [4, 324], strides = [1, 1]} : vector<4x362xbf16> to vector<4x324xbf16>
    %c6 = arith.constant 6 : index
    %c0_35 = arith.constant 0 : index
    %c0_36 = arith.constant 0 : index
    %43 = vector.load %arg5[%c6, %c0_35, %c0_36] : memref<27x4x4xbf16, #tpu.memory_space<vmem>>, vector<1x4x4xbf16>
    %44 = vector.shape_cast %43 : vector<1x4x4xbf16> to vector<4x4xbf16>
    %cst_37 = arith.constant dense<0.000000e+00> : vector<4x324xf32>
    %45 = tpu.matmul %44, %42, %cst_37 {dimension_numbers = #tpu.dot_dimension_numbers<[1], [0], [0], [1], [0, 0, 1, 1], [], []>} : vector<4x4xbf16>, vector<4x324xbf16>, vector<4x324xf32> -> vector<4x324xf32>
    %46 = arith.addf %41, %45 : vector<4x324xf32>
    %47 = vector.extract_strided_slice %6 {offsets = [0, 37], sizes = [4, 324], strides = [1, 1]} : vector<4x362xbf16> to vector<4x324xbf16>
    %c7 = arith.constant 7 : index
    %c0_38 = arith.constant 0 : index
    %c0_39 = arith.constant 0 : index
    %48 = vector.load %arg5[%c7, %c0_38, %c0_39] : memref<27x4x4xbf16, #tpu.memory_space<vmem>>, vector<1x4x4xbf16>
    %49 = vector.shape_cast %48 : vector<1x4x4xbf16> to vector<4x4xbf16>
    %cst_40 = arith.constant dense<0.000000e+00> : vector<4x324xf32>
    %50 = tpu.matmul %49, %47, %cst_40 {dimension_numbers = #tpu.dot_dimension_numbers<[1], [0], [0], [1], [0, 0, 1, 1], [], []>} : vector<4x4xbf16>, vector<4x324xbf16>, vector<4x324xf32> -> vector<4x324xf32>
    %51 = arith.addf %46, %50 : vector<4x324xf32>
    %52 = vector.extract_strided_slice %6 {offsets = [0, 38], sizes = [4, 324], strides = [1, 1]} : vector<4x362xbf16> to vector<4x324xbf16>
    %c8 = arith.constant 8 : index
    %c0_41 = arith.constant 0 : index
    %c0_42 = arith.constant 0 : index
    %53 = vector.load %arg5[%c8, %c0_41, %c0_42] : memref<27x4x4xbf16, #tpu.memory_space<vmem>>, vector<1x4x4xbf16>
    %54 = vector.shape_cast %53 : vector<1x4x4xbf16> to vector<4x4xbf16>
    %cst_43 = arith.constant dense<0.000000e+00> : vector<4x324xf32>
    %55 = tpu.matmul %54, %52, %cst_43 {dimension_numbers = #tpu.dot_dimension_numbers<[1], [0], [0], [1], [0, 0, 1, 1], [], []>} : vector<4x4xbf16>, vector<4x324xbf16>, vector<4x324xf32> -> vector<4x324xf32>
    %56 = arith.addf %51, %55 : vector<4x324xf32>
    %57 = vector.extract_strided_slice %8 {offsets = [0, 0], sizes = [4, 324], strides = [1, 1]} : vector<4x362xbf16> to vector<4x324xbf16>
    %c9 = arith.constant 9 : index
    %c0_44 = arith.constant 0 : index
    %c0_45 = arith.constant 0 : index
    %58 = vector.load %arg5[%c9, %c0_44, %c0_45] : memref<27x4x4xbf16, #tpu.memory_space<vmem>>, vector<1x4x4xbf16>
    %59 = vector.shape_cast %58 : vector<1x4x4xbf16> to vector<4x4xbf16>
    %cst_46 = arith.constant dense<0.000000e+00> : vector<4x324xf32>
    %60 = tpu.matmul %59, %57, %cst_46 {dimension_numbers = #tpu.dot_dimension_numbers<[1], [0], [0], [1], [0, 0, 1, 1], [], []>} : vector<4x4xbf16>, vector<4x324xbf16>, vector<4x324xf32> -> vector<4x324xf32>
    %61 = arith.addf %56, %60 : vector<4x324xf32>
    %62 = vector.extract_strided_slice %8 {offsets = [0, 1], sizes = [4, 324], strides = [1, 1]} : vector<4x362xbf16> to vector<4x324xbf16>
    %c10 = arith.constant 10 : index
    %c0_47 = arith.constant 0 : index
    %c0_48 = arith.constant 0 : index
    %63 = vector.load %arg5[%c10, %c0_47, %c0_48] : memref<27x4x4xbf16, #tpu.memory_space<vmem>>, vector<1x4x4xbf16>
    %64 = vector.shape_cast %63 : vector<1x4x4xbf16> to vector<4x4xbf16>
    %cst_49 = arith.constant dense<0.000000e+00> : vector<4x324xf32>
    %65 = tpu.matmul %64, %62, %cst_49 {dimension_numbers = #tpu.dot_dimension_numbers<[1], [0], [0], [1], [0, 0, 1, 1], [], []>} : vector<4x4xbf16>, vector<4x324xbf16>, vector<4x324xf32> -> vector<4x324xf32>
    %66 = arith.addf %61, %65 : vector<4x324xf32>
    %67 = vector.extract_strided_slice %8 {offsets = [0, 2], sizes = [4, 324], strides = [1, 1]} : vector<4x362xbf16> to vector<4x324xbf16>
    %c11 = arith.constant 11 : index
    %c0_50 = arith.constant 0 : index
    %c0_51 = arith.constant 0 : index
    %68 = vector.load %arg5[%c11, %c0_50, %c0_51] : memref<27x4x4xbf16, #tpu.memory_space<vmem>>, vector<1x4x4xbf16>
    %69 = vector.shape_cast %68 : vector<1x4x4xbf16> to vector<4x4xbf16>
    %cst_52 = arith.constant dense<0.000000e+00> : vector<4x324xf32>
    %70 = tpu.matmul %69, %67, %cst_52 {dimension_numbers = #tpu.dot_dimension_numbers<[1], [0], [0], [1], [0, 0, 1, 1], [], []>} : vector<4x4xbf16>, vector<4x324xbf16>, vector<4x324xf32> -> vector<4x324xf32>
    %71 = arith.addf %66, %70 : vector<4x324xf32>
    %72 = vector.extract_strided_slice %8 {offsets = [0, 18], sizes = [4, 324], strides = [1, 1]} : vector<4x362xbf16> to vector<4x324xbf16>
    %c12 = arith.constant 12 : index
    %c0_53 = arith.constant 0 : index
    %c0_54 = arith.constant 0 : index
    %73 = vector.load %arg5[%c12, %c0_53, %c0_54] : memref<27x4x4xbf16, #tpu.memory_space<vmem>>, vector<1x4x4xbf16>
    %74 = vector.shape_cast %73 : vector<1x4x4xbf16> to vector<4x4xbf16>
    %cst_55 = arith.constant dense<0.000000e+00> : vector<4x324xf32>
    %75 = tpu.matmul %74, %72, %cst_55 {dimension_numbers = #tpu.dot_dimension_numbers<[1], [0], [0], [1], [0, 0, 1, 1], [], []>} : vector<4x4xbf16>, vector<4x324xbf16>, vector<4x324xf32> -> vector<4x324xf32>
    %76 = arith.addf %71, %75 : vector<4x324xf32>
    %77 = vector.extract_strided_slice %8 {offsets = [0, 19], sizes = [4, 324], strides = [1, 1]} : vector<4x362xbf16> to vector<4x324xbf16>
    %c13 = arith.constant 13 : index
    %c0_56 = arith.constant 0 : index
    %c0_57 = arith.constant 0 : index
    %78 = vector.load %arg5[%c13, %c0_56, %c0_57] : memref<27x4x4xbf16, #tpu.memory_space<vmem>>, vector<1x4x4xbf16>
    %79 = vector.shape_cast %78 : vector<1x4x4xbf16> to vector<4x4xbf16>
    %cst_58 = arith.constant dense<0.000000e+00> : vector<4x324xf32>
    %80 = tpu.matmul %79, %77, %cst_58 {dimension_numbers = #tpu.dot_dimension_numbers<[1], [0], [0], [1], [0, 0, 1, 1], [], []>} : vector<4x4xbf16>, vector<4x324xbf16>, vector<4x324xf32> -> vector<4x324xf32>
    %81 = arith.addf %76, %80 : vector<4x324xf32>
    %82 = vector.extract_strided_slice %8 {offsets = [0, 20], sizes = [4, 324], strides = [1, 1]} : vector<4x362xbf16> to vector<4x324xbf16>
    %c14 = arith.constant 14 : index
    %c0_59 = arith.constant 0 : index
    %c0_60 = arith.constant 0 : index
    %83 = vector.load %arg5[%c14, %c0_59, %c0_60] : memref<27x4x4xbf16, #tpu.memory_space<vmem>>, vector<1x4x4xbf16>
    %84 = vector.shape_cast %83 : vector<1x4x4xbf16> to vector<4x4xbf16>
    %cst_61 = arith.constant dense<0.000000e+00> : vector<4x324xf32>
    %85 = tpu.matmul %84, %82, %cst_61 {dimension_numbers = #tpu.dot_dimension_numbers<[1], [0], [0], [1], [0, 0, 1, 1], [], []>} : vector<4x4xbf16>, vector<4x324xbf16>, vector<4x324xf32> -> vector<4x324xf32>
    %86 = arith.addf %81, %85 : vector<4x324xf32>
    %87 = vector.extract_strided_slice %8 {offsets = [0, 36], sizes = [4, 324], strides = [1, 1]} : vector<4x362xbf16> to vector<4x324xbf16>
    %c15 = arith.constant 15 : index
    %c0_62 = arith.constant 0 : index
    %c0_63 = arith.constant 0 : index
    %88 = vector.load %arg5[%c15, %c0_62, %c0_63] : memref<27x4x4xbf16, #tpu.memory_space<vmem>>, vector<1x4x4xbf16>
    %89 = vector.shape_cast %88 : vector<1x4x4xbf16> to vector<4x4xbf16>
    %cst_64 = arith.constant dense<0.000000e+00> : vector<4x324xf32>
    %90 = tpu.matmul %89, %87, %cst_64 {dimension_numbers = #tpu.dot_dimension_numbers<[1], [0], [0], [1], [0, 0, 1, 1], [], []>} : vector<4x4xbf16>, vector<4x324xbf16>, vector<4x324xf32> -> vector<4x324xf32>
    %91 = arith.addf %86, %90 : vector<4x324xf32>
    %92 = vector.extract_strided_slice %8 {offsets = [0, 37], sizes = [4, 324], strides = [1, 1]} : vector<4x362xbf16> to vector<4x324xbf16>
    %c16 = arith.constant 16 : index
    %c0_65 = arith.constant 0 : index
    %c0_66 = arith.constant 0 : index
    %93 = vector.load %arg5[%c16, %c0_65, %c0_66] : memref<27x4x4xbf16, #tpu.memory_space<vmem>>, vector<1x4x4xbf16>
    %94 = vector.shape_cast %93 : vector<1x4x4xbf16> to vector<4x4xbf16>
    %cst_67 = arith.constant dense<0.000000e+00> : vector<4x324xf32>
    %95 = tpu.matmul %94, %92, %cst_67 {dimension_numbers = #tpu.dot_dimension_numbers<[1], [0], [0], [1], [0, 0, 1, 1], [], []>} : vector<4x4xbf16>, vector<4x324xbf16>, vector<4x324xf32> -> vector<4x324xf32>
    %96 = arith.addf %91, %95 : vector<4x324xf32>
    %97 = vector.extract_strided_slice %8 {offsets = [0, 38], sizes = [4, 324], strides = [1, 1]} : vector<4x362xbf16> to vector<4x324xbf16>
    %c17 = arith.constant 17 : index
    %c0_68 = arith.constant 0 : index
    %c0_69 = arith.constant 0 : index
    %98 = vector.load %arg5[%c17, %c0_68, %c0_69] : memref<27x4x4xbf16, #tpu.memory_space<vmem>>, vector<1x4x4xbf16>
    %99 = vector.shape_cast %98 : vector<1x4x4xbf16> to vector<4x4xbf16>
    %cst_70 = arith.constant dense<0.000000e+00> : vector<4x324xf32>
    %100 = tpu.matmul %99, %97, %cst_70 {dimension_numbers = #tpu.dot_dimension_numbers<[1], [0], [0], [1], [0, 0, 1, 1], [], []>} : vector<4x4xbf16>, vector<4x324xbf16>, vector<4x324xf32> -> vector<4x324xf32>
    %101 = arith.addf %96, %100 : vector<4x324xf32>
    %102 = vector.extract_strided_slice %10 {offsets = [0, 0], sizes = [4, 324], strides = [1, 1]} : vector<4x362xbf16> to vector<4x324xbf16>
    %c18 = arith.constant 18 : index
    %c0_71 = arith.constant 0 : index
    %c0_72 = arith.constant 0 : index
    %103 = vector.load %arg5[%c18, %c0_71, %c0_72] : memref<27x4x4xbf16, #tpu.memory_space<vmem>>, vector<1x4x4xbf16>
    %104 = vector.shape_cast %103 : vector<1x4x4xbf16> to vector<4x4xbf16>
    %cst_73 = arith.constant dense<0.000000e+00> : vector<4x324xf32>
    %105 = tpu.matmul %104, %102, %cst_73 {dimension_numbers = #tpu.dot_dimension_numbers<[1], [0], [0], [1], [0, 0, 1, 1], [], []>} : vector<4x4xbf16>, vector<4x324xbf16>, vector<4x324xf32> -> vector<4x324xf32>
    %106 = arith.addf %101, %105 : vector<4x324xf32>
    %107 = vector.extract_strided_slice %10 {offsets = [0, 1], sizes = [4, 324], strides = [1, 1]} : vector<4x362xbf16> to vector<4x324xbf16>
    %c19 = arith.constant 19 : index
    %c0_74 = arith.constant 0 : index
    %c0_75 = arith.constant 0 : index
    %108 = vector.load %arg5[%c19, %c0_74, %c0_75] : memref<27x4x4xbf16, #tpu.memory_space<vmem>>, vector<1x4x4xbf16>
    %109 = vector.shape_cast %108 : vector<1x4x4xbf16> to vector<4x4xbf16>
    %cst_76 = arith.constant dense<0.000000e+00> : vector<4x324xf32>
    %110 = tpu.matmul %109, %107, %cst_76 {dimension_numbers = #tpu.dot_dimension_numbers<[1], [0], [0], [1], [0, 0, 1, 1], [], []>} : vector<4x4xbf16>, vector<4x324xbf16>, vector<4x324xf32> -> vector<4x324xf32>
    %111 = arith.addf %106, %110 : vector<4x324xf32>
    %112 = vector.extract_strided_slice %10 {offsets = [0, 2], sizes = [4, 324], strides = [1, 1]} : vector<4x362xbf16> to vector<4x324xbf16>
    %c20 = arith.constant 20 : index
    %c0_77 = arith.constant 0 : index
    %c0_78 = arith.constant 0 : index
    %113 = vector.load %arg5[%c20, %c0_77, %c0_78] : memref<27x4x4xbf16, #tpu.memory_space<vmem>>, vector<1x4x4xbf16>
    %114 = vector.shape_cast %113 : vector<1x4x4xbf16> to vector<4x4xbf16>
    %cst_79 = arith.constant dense<0.000000e+00> : vector<4x324xf32>
    %115 = tpu.matmul %114, %112, %cst_79 {dimension_numbers = #tpu.dot_dimension_numbers<[1], [0], [0], [1], [0, 0, 1, 1], [], []>} : vector<4x4xbf16>, vector<4x324xbf16>, vector<4x324xf32> -> vector<4x324xf32>
    %116 = arith.addf %111, %115 : vector<4x324xf32>
    %117 = vector.extract_strided_slice %10 {offsets = [0, 18], sizes = [4, 324], strides = [1, 1]} : vector<4x362xbf16> to vector<4x324xbf16>
    %c21 = arith.constant 21 : index
    %c0_80 = arith.constant 0 : index
    %c0_81 = arith.constant 0 : index
    %118 = vector.load %arg5[%c21, %c0_80, %c0_81] : memref<27x4x4xbf16, #tpu.memory_space<vmem>>, vector<1x4x4xbf16>
    %119 = vector.shape_cast %118 : vector<1x4x4xbf16> to vector<4x4xbf16>
    %cst_82 = arith.constant dense<0.000000e+00> : vector<4x324xf32>
    %120 = tpu.matmul %119, %117, %cst_82 {dimension_numbers = #tpu.dot_dimension_numbers<[1], [0], [0], [1], [0, 0, 1, 1], [], []>} : vector<4x4xbf16>, vector<4x324xbf16>, vector<4x324xf32> -> vector<4x324xf32>
    %121 = arith.addf %116, %120 : vector<4x324xf32>
    %122 = vector.extract_strided_slice %10 {offsets = [0, 19], sizes = [4, 324], strides = [1, 1]} : vector<4x362xbf16> to vector<4x324xbf16>
    %c22 = arith.constant 22 : index
    %c0_83 = arith.constant 0 : index
    %c0_84 = arith.constant 0 : index
    %123 = vector.load %arg5[%c22, %c0_83, %c0_84] : memref<27x4x4xbf16, #tpu.memory_space<vmem>>, vector<1x4x4xbf16>
    %124 = vector.shape_cast %123 : vector<1x4x4xbf16> to vector<4x4xbf16>
    %cst_85 = arith.constant dense<0.000000e+00> : vector<4x324xf32>
    %125 = tpu.matmul %124, %122, %cst_85 {dimension_numbers = #tpu.dot_dimension_numbers<[1], [0], [0], [1], [0, 0, 1, 1], [], []>} : vector<4x4xbf16>, vector<4x324xbf16>, vector<4x324xf32> -> vector<4x324xf32>
    %126 = arith.addf %121, %125 : vector<4x324xf32>
    %127 = vector.extract_strided_slice %10 {offsets = [0, 20], sizes = [4, 324], strides = [1, 1]} : vector<4x362xbf16> to vector<4x324xbf16>
    %c23 = arith.constant 23 : index
    %c0_86 = arith.constant 0 : index
    %c0_87 = arith.constant 0 : index
    %128 = vector.load %arg5[%c23, %c0_86, %c0_87] : memref<27x4x4xbf16, #tpu.memory_space<vmem>>, vector<1x4x4xbf16>
    %129 = vector.shape_cast %128 : vector<1x4x4xbf16> to vector<4x4xbf16>
    %cst_88 = arith.constant dense<0.000000e+00> : vector<4x324xf32>
    %130 = tpu.matmul %129, %127, %cst_88 {dimension_numbers = #tpu.dot_dimension_numbers<[1], [0], [0], [1], [0, 0, 1, 1], [], []>} : vector<4x4xbf16>, vector<4x324xbf16>, vector<4x324xf32> -> vector<4x324xf32>
    %131 = arith.addf %126, %130 : vector<4x324xf32>
    %132 = vector.extract_strided_slice %10 {offsets = [0, 36], sizes = [4, 324], strides = [1, 1]} : vector<4x362xbf16> to vector<4x324xbf16>
    %c24 = arith.constant 24 : index
    %c0_89 = arith.constant 0 : index
    %c0_90 = arith.constant 0 : index
    %133 = vector.load %arg5[%c24, %c0_89, %c0_90] : memref<27x4x4xbf16, #tpu.memory_space<vmem>>, vector<1x4x4xbf16>
    %134 = vector.shape_cast %133 : vector<1x4x4xbf16> to vector<4x4xbf16>
    %cst_91 = arith.constant dense<0.000000e+00> : vector<4x324xf32>
    %135 = tpu.matmul %134, %132, %cst_91 {dimension_numbers = #tpu.dot_dimension_numbers<[1], [0], [0], [1], [0, 0, 1, 1], [], []>} : vector<4x4xbf16>, vector<4x324xbf16>, vector<4x324xf32> -> vector<4x324xf32>
    %136 = arith.addf %131, %135 : vector<4x324xf32>
    %137 = vector.extract_strided_slice %10 {offsets = [0, 37], sizes = [4, 324], strides = [1, 1]} : vector<4x362xbf16> to vector<4x324xbf16>
    %c25 = arith.constant 25 : index
    %c0_92 = arith.constant 0 : index
    %c0_93 = arith.constant 0 : index
    %138 = vector.load %arg5[%c25, %c0_92, %c0_93] : memref<27x4x4xbf16, #tpu.memory_space<vmem>>, vector<1x4x4xbf16>
    %139 = vector.shape_cast %138 : vector<1x4x4xbf16> to vector<4x4xbf16>
    %cst_94 = arith.constant dense<0.000000e+00> : vector<4x324xf32>
    %140 = tpu.matmul %139, %137, %cst_94 {dimension_numbers = #tpu.dot_dimension_numbers<[1], [0], [0], [1], [0, 0, 1, 1], [], []>} : vector<4x4xbf16>, vector<4x324xbf16>, vector<4x324xf32> -> vector<4x324xf32>
    %141 = arith.addf %136, %140 : vector<4x324xf32>
    %142 = vector.extract_strided_slice %10 {offsets = [0, 38], sizes = [4, 324], strides = [1, 1]} : vector<4x362xbf16> to vector<4x324xbf16>
    %c26 = arith.constant 26 : index
    %c0_95 = arith.constant 0 : index
    %c0_96 = arith.constant 0 : index
    %143 = vector.load %arg5[%c26, %c0_95, %c0_96] : memref<27x4x4xbf16, #tpu.memory_space<vmem>>, vector<1x4x4xbf16>
    %144 = vector.shape_cast %143 : vector<1x4x4xbf16> to vector<4x4xbf16>
    %cst_97 = arith.constant dense<0.000000e+00> : vector<4x324xf32>
    %145 = tpu.matmul %144, %142, %cst_97 {dimension_numbers = #tpu.dot_dimension_numbers<[1], [0], [0], [1], [0, 0, 1, 1], [], []>} : vector<4x4xbf16>, vector<4x324xbf16>, vector<4x324xf32> -> vector<4x324xf32>
    %146 = arith.addf %141, %145 : vector<4x324xf32>
    %c0_98 = arith.constant 0 : index
    %c0_99 = arith.constant 0 : index
    %c0_100 = arith.constant 0 : index
    %c0_101 = arith.constant 0 : index
    %147 = vector.load %arg7[%c0_98, %c0_99, %c0_100, %c0_101] : memref<1x1x4x324xf32, #tpu.memory_space<vmem>>, vector<1x1x4x324xf32>
    %148 = vector.shape_cast %147 : vector<1x1x4x324xf32> to vector<4x324xf32>
    %149 = vector.shape_cast %146 : vector<4x324xf32> to vector<1x1x4x324xf32>
    tpu.vector_store %arg7[%c0_98, %c0_99, %c0_100, %c0_101], %149 {strides = array<i32>} : memref<1x1x4x324xf32, #tpu.memory_space<vmem>>, vector<1x1x4x324xf32>,
    %c0_102 = arith.constant 0 : index
    %c0_103 = arith.constant 0 : index
    %150 = vector.load %arg6[%c0_102, %c0_103] : memref<1x324xf32, #tpu.memory_space<vmem>>, vector<1x324xf32>
    %151 = vector.broadcast %150 : vector<1x324xf32> to vector<4x324xf32>
    %152 = arith.mulf %146, %151 : vector<4x324xf32>
    %c0_104 = arith.constant 0 : index
    %c0_105 = arith.constant 0 : index
    %153 = vector.load %arg8[%c0_104, %c0_105] : memref<4x1xf32, #tpu.memory_space<vmem>>, vector<4x1xf32>
    %cst_106 = arith.constant dense<0.000000e+00> : vector<4xf32>
    %154 = vector.multi_reduction <add>, %152, %cst_106 [1] : vector<4x324xf32> to vector<4xf32>
    %155 = vector.shape_cast %154 : vector<4xf32> to vector<4x1xf32>
    %156 = arith.addf %153, %155 : vector<4x1xf32>
    %c0_107 = arith.constant 0 : index
    %c0_108 = arith.constant 0 : index
    %157 = vector.load %arg8[%c0_107, %c0_108] : memref<4x1xf32, #tpu.memory_space<vmem>>, vector<4x1xf32>
    tpu.vector_store %arg8[%c0_107, %c0_108], %156 {strides = array<i32>} : memref<4x1xf32, #tpu.memory_space<vmem>>, vector<4x1xf32>,
    %c0_109 = arith.constant 0 : index
    %c0_110 = arith.constant 0 : index
    %158 = vector.load %arg9[%c0_109, %c0_110] : memref<4x1xf32, #tpu.memory_space<vmem>>, vector<4x1xf32>
    %159 = arith.mulf %152, %152 : vector<4x324xf32>
    %cst_111 = arith.constant dense<0.000000e+00> : vector<4xf32>
    %160 = vector.multi_reduction <add>, %159, %cst_111 [1] : vector<4x324xf32> to vector<4xf32>
    %161 = vector.shape_cast %160 : vector<4xf32> to vector<4x1xf32>
    %162 = arith.addf %158, %161 : vector<4x1xf32>
    %c0_112 = arith.constant 0 : index
    %c0_113 = arith.constant 0 : index
    %163 = vector.load %arg9[%c0_112, %c0_113] : memref<4x1xf32, #tpu.memory_space<vmem>>, vector<4x1xf32>
    tpu.vector_store %arg9[%c0_112, %c0_113], %162 {strides = array<i32>} : memref<4x1xf32, #tpu.memory_space<vmem>>, vector<4x1xf32>,
    return
  }
  func.func @transform_0(%arg0: i32, %arg1: i32) -> (i32, i32, i32, i32, i32) {
    %c0_i32 = arith.constant 0 : i32
    %0 = arith.addi %arg1, %c0_i32 : i32
    %c0_i32_0 = arith.constant 0 : i32
    %c0_i32_1 = arith.constant 0 : i32
    %c0_i32_2 = arith.constant 0 : i32
    %c0_i32_3 = arith.constant 0 : i32
    return %arg0, %c0_i32_0, %0, %c0_i32_1, %c0_i32_2 : i32, i32, i32, i32, i32
  }
  func.func @transform_1(%arg0: i32, %arg1: i32) -> (i32, i32, i32, i32, i32) {
    %c1_i32 = arith.constant 1 : i32
    %0 = arith.addi %arg1, %c1_i32 : i32
    %c0_i32 = arith.constant 0 : i32
    %c0_i32_0 = arith.constant 0 : i32
    %c0_i32_1 = arith.constant 0 : i32
    %c0_i32_2 = arith.constant 0 : i32
    return %arg0, %c0_i32, %0, %c0_i32_0, %c0_i32_1 : i32, i32, i32, i32, i32
  }
  func.func @transform_2(%arg0: i32, %arg1: i32) -> (i32, i32, i32, i32, i32) {
    %c2_i32 = arith.constant 2 : i32
    %0 = arith.addi %arg1, %c2_i32 : i32
    %c0_i32 = arith.constant 0 : i32
    %c0_i32_0 = arith.constant 0 : i32
    %c0_i32_1 = arith.constant 0 : i32
    %c0_i32_2 = arith.constant 0 : i32
    return %arg0, %c0_i32, %0, %c0_i32_0, %c0_i32_1 : i32, i32, i32, i32, i32
  }
  func.func @transform_3(%arg0: i32, %arg1: i32) -> (i32, i32, i32) {
    %c0_i32 = arith.constant 0 : i32
    %c0_i32_0 = arith.constant 0 : i32
    %c0_i32_1 = arith.constant 0 : i32
    %c0_i32_2 = arith.constant 0 : i32
    return %c0_i32, %c0_i32_0, %c0_i32_1 : i32, i32, i32
  }
  func.func @transform_4(%arg0: i32, %arg1: i32) -> (i32, i32) {
    %c0_i32 = arith.constant 0 : i32
    %c0_i32_0 = arith.constant 0 : i32
    %c0_i32_1 = arith.constant 0 : i32
    return %c0_i32, %c0_i32_0 : i32, i32
  }
  func.func @transform_5(%arg0: i32, %arg1: i32) -> (i32, i32, i32, i32) {
    %c0_i32 = arith.constant 0 : i32
    %c0_i32_0 = arith.constant 0 : i32
    %c0_i32_1 = arith.constant 0 : i32
    return %arg0, %arg1, %c0_i32, %c0_i32_0 : i32, i32, i32, i32
  }
  func.func @transform_6(%arg0: i32, %arg1: i32) -> (i32, i32) {
    %c0_i32 = arith.constant 0 : i32
    %c0_i32_0 = arith.constant 0 : i32
    %c0_i32_1 = arith.constant 0 : i32
    return %c0_i32, %c0_i32_0 : i32, i32
  }
  func.func @transform_7(%arg0: i32, %arg1: i32) -> (i32, i32) {
    %c0_i32 = arith.constant 0 : i32
    %c0_i32_0 = arith.constant 0 : i32
    %c0_i32_1 = arith.constant 0 : i32
    return %c0_i32, %c0_i32_0 : i32, i32
  }
}

module attributes {stable_mosaic.version = 11 : i64} {
  func.func @_bn_prelu_repad_kernel(%arg0: i32, %arg1: i32, %arg2: memref<1x1x4x324xf32, #tpu.memory_space<vmem>>, %arg3: memref<4x1xf32, #tpu.memory_space<vmem>>, %arg4: memref<4x1xf32, #tpu.memory_space<vmem>>, %arg5: memref<1x1xf32, #tpu.memory_space<vmem>>, %arg6: memref<1x324xf32, #tpu.memory_space<vmem>>, %arg7: memref<1x4x1x1x362xbf16, #tpu.memory_space<vmem>>) attributes {dimension_semantics = [#tpu.dimension_semantics<parallel>, #tpu.dimension_semantics<arbitrary>], iteration_bounds = array<i64: 2, 10>, scalar_prefetch = 0 : i64, scratch_operands = 0 : i64, tpu.core_type = #tpu.core_type<tc>, window_params = [{transform_indices = @transform_0, window_bounds = array<i64: 1, 1, 4, 324>}, {pipeline_mode = #tpu.pipeline_mode<synchronous>, transform_indices = @transform_1, window_bounds = array<i64: 4, 1>}, {pipeline_mode = #tpu.pipeline_mode<synchronous>, transform_indices = @transform_2, window_bounds = array<i64: 4, 1>}, {pipeline_mode = #tpu.pipeline_mode<synchronous>, transform_indices = @transform_3, window_bounds = array<i64: 1, 1>}, {pipeline_mode = #tpu.pipeline_mode<synchronous>, transform_indices = @transform_4, window_bounds = array<i64: 1, 324>}, {transform_indices = @transform_5, window_bounds = array<i64: 1, 4, 1, 1, 362>}]} {
    %cst = arith.constant 0.000000e+00 : bf16
    %0 = vector.broadcast %cst : bf16 to vector<1x4x1x1x362xbf16>
    %c0 = arith.constant 0 : index
    %c0_0 = arith.constant 0 : index
    %c0_1 = arith.constant 0 : index
    %c0_2 = arith.constant 0 : index
    %c0_3 = arith.constant 0 : index
    %1 = vector.load %arg7[%c0, %c0_0, %c0_1, %c0_2, %c0_3] : memref<1x4x1x1x362xbf16, #tpu.memory_space<vmem>>, vector<1x4x1x1x362xbf16>
    tpu.vector_store %arg7[%c0, %c0_0, %c0_1, %c0_2, %c0_3], %0 {strides = array<i32>} : memref<1x4x1x1x362xbf16, #tpu.memory_space<vmem>>, vector<1x4x1x1x362xbf16>,
    %c0_i32 = arith.constant 0 : i32
    %2 = arith.cmpi sgt, %arg1, %c0_i32 : i32
    %c9_i32 = arith.constant 9 : i32
    %3 = arith.cmpi slt, %arg1, %c9_i32 : i32
    %4 = arith.andi %2, %3 : i1
    %5 = arith.extui %4 : i1 to i32
    %c0_i32_4 = arith.constant 0 : i32
    %6 = arith.cmpi ne, %5, %c0_i32_4 : i32
    scf.if %6 {
      %c0_5 = arith.constant 0 : index
      %c0_6 = arith.constant 0 : index
      %c0_7 = arith.constant 0 : index
      %c0_8 = arith.constant 0 : index
      %7 = vector.load %arg2[%c0_5, %c0_6, %c0_7, %c0_8] : memref<1x1x4x324xf32, #tpu.memory_space<vmem>>, vector<1x1x4x324xf32>
      %8 = vector.shape_cast %7 : vector<1x1x4x324xf32> to vector<4x324xf32>
      %c0_9 = arith.constant 0 : index
      %c0_10 = arith.constant 0 : index
      %9 = vector.load %arg3[%c0_9, %c0_10] : memref<4x1xf32, #tpu.memory_space<vmem>>, vector<4x1xf32>
      %10 = vector.broadcast %9 : vector<4x1xf32> to vector<4x324xf32>
      %11 = arith.mulf %8, %10 : vector<4x324xf32>
      %c0_11 = arith.constant 0 : index
      %c0_12 = arith.constant 0 : index
      %12 = vector.load %arg4[%c0_11, %c0_12] : memref<4x1xf32, #tpu.memory_space<vmem>>, vector<4x1xf32>
      %13 = vector.broadcast %12 : vector<4x1xf32> to vector<4x324xf32>
      %14 = arith.addf %11, %13 : vector<4x324xf32>
      %cst_13 = arith.constant 0.000000e+00 : f32
      %15 = vector.broadcast %cst_13 : f32 to vector<4x324xf32>
      %16 = arith.cmpf ogt, %14, %15 : vector<4x324xf32>
      %c0_14 = arith.constant 0 : index
      %c0_15 = arith.constant 0 : index
      %17 = vector.load %arg5[%c0_14, %c0_15] : memref<1x1xf32, #tpu.memory_space<vmem>>, vector<1x1xf32>
      %18 = vector.broadcast %17 : vector<1x1xf32> to vector<4x324xf32>
      %19 = arith.mulf %18, %14 : vector<4x324xf32>
      %20 = arith.select %16, %14, %19 : vector<4x324xi1>, vector<4x324xf32>
      %c0_16 = arith.constant 0 : index
      %c0_17 = arith.constant 0 : index
      %21 = vector.load %arg6[%c0_16, %c0_17] : memref<1x324xf32, #tpu.memory_space<vmem>>, vector<1x324xf32>
      %22 = vector.broadcast %21 : vector<1x324xf32> to vector<4x324xf32>
      %23 = arith.mulf %20, %22 : vector<4x324xf32>
      %24 = arith.truncf %23 : vector<4x324xf32> to vector<4x324xbf16>
      %c0_18 = arith.constant 0 : index
      %c0_19 = arith.constant 0 : index
      %c0_20 = arith.constant 0 : index
      %c0_21 = arith.constant 0 : index
      %c19 = arith.constant 19 : index
      %25 = vector.load %arg7[%c0_18, %c0_19, %c0_20, %c0_21, %c19] : memref<1x4x1x1x362xbf16, #tpu.memory_space<vmem>>, vector<1x4x1x1x324xbf16>
      %26 = vector.shape_cast %25 : vector<1x4x1x1x324xbf16> to vector<4x324xbf16>
      %27 = vector.shape_cast %24 : vector<4x324xbf16> to vector<1x4x1x1x324xbf16>
      tpu.vector_store %arg7[%c0_18, %c0_19, %c0_20, %c0_21, %c19], %27 {strides = array<i32>} : memref<1x4x1x1x362xbf16, #tpu.memory_space<vmem>>, vector<1x4x1x1x324xbf16>,
    } else {
    }
    return
  }
  func.func @transform_0(%arg0: i32, %arg1: i32) -> (i32, i32, i32, i32) {
    %c1_i32 = arith.constant 1 : i32
    %0 = arith.subi %arg1, %c1_i32 : i32
    %c0_i32 = arith.constant 0 : i32
    %c7_i32 = arith.constant 7 : i32
    %1 = arith.maxsi %c0_i32, %0 : i32
    %2 = arith.minsi %c7_i32, %1 : i32
    %c0_i32_0 = arith.constant 0 : i32
    %c0_i32_1 = arith.constant 0 : i32
    %c0_i32_2 = arith.constant 0 : i32
    return %arg0, %2, %c0_i32_0, %c0_i32_1 : i32, i32, i32, i32
  }
  func.func @transform_1(%arg0: i32, %arg1: i32) -> (i32, i32) {
    %c0_i32 = arith.constant 0 : i32
    %c0_i32_0 = arith.constant 0 : i32
    %c0_i32_1 = arith.constant 0 : i32
    return %c0_i32, %c0_i32_0 : i32, i32
  }
  func.func @transform_2(%arg0: i32, %arg1: i32) -> (i32, i32) {
    %c0_i32 = arith.constant 0 : i32
    %c0_i32_0 = arith.constant 0 : i32
    %c0_i32_1 = arith.constant 0 : i32
    return %c0_i32, %c0_i32_0 : i32, i32
  }
  func.func @transform_3(%arg0: i32, %arg1: i32) -> (i32, i32) {
    %c0_i32 = arith.constant 0 : i32
    %c0_i32_0 = arith.constant 0 : i32
    %c0_i32_1 = arith.constant 0 : i32
    return %c0_i32, %c0_i32_0 : i32, i32
  }
  func.func @transform_4(%arg0: i32, %arg1: i32) -> (i32, i32) {
    %c0_i32 = arith.constant 0 : i32
    %c0_i32_0 = arith.constant 0 : i32
    %c0_i32_1 = arith.constant 0 : i32
    return %c0_i32, %c0_i32_0 : i32, i32
  }
  func.func @transform_5(%arg0: i32, %arg1: i32) -> (i32, i32, i32, i32, i32) {
    %c0_i32 = arith.constant 0 : i32
    %c0_i32_0 = arith.constant 0 : i32
    %c0_i32_1 = arith.constant 0 : i32
    %c0_i32_2 = arith.constant 0 : i32
    return %arg0, %c0_i32, %arg1, %c0_i32_0, %c0_i32_1 : i32, i32, i32, i32, i32
  }
}

module attributes {stable_mosaic.version = 11 : i64} {
  func.func @_bn_residual_kernel(%arg0: i32, %arg1: i32, %arg2: memref<1x1x4x324xf32, #tpu.memory_space<vmem>>, %arg3: memref<1x4x1x1x324xf32, #tpu.memory_space<vmem>>, %arg4: memref<4x1xf32, #tpu.memory_space<vmem>>, %arg5: memref<4x1xf32, #tpu.memory_space<vmem>>, %arg6: memref<1x4x1x1x324xf32, #tpu.memory_space<vmem>>) attributes {dimension_semantics = [#tpu.dimension_semantics<parallel>, #tpu.dimension_semantics<arbitrary>], iteration_bounds = array<i64: 2, 8>, scalar_prefetch = 0 : i64, scratch_operands = 0 : i64, tpu.core_type = #tpu.core_type<tc>, window_params = [{transform_indices = @transform_0, window_bounds = array<i64: 1, 1, 4, 324>}, {transform_indices = @transform_1, window_bounds = array<i64: 1, 4, 1, 1, 324>}, {pipeline_mode = #tpu.pipeline_mode<synchronous>, transform_indices = @transform_2, window_bounds = array<i64: 4, 1>}, {pipeline_mode = #tpu.pipeline_mode<synchronous>, transform_indices = @transform_3, window_bounds = array<i64: 4, 1>}, {transform_indices = @transform_4, window_bounds = array<i64: 1, 4, 1, 1, 324>}]} {
    %c0 = arith.constant 0 : index
    %c0_0 = arith.constant 0 : index
    %c0_1 = arith.constant 0 : index
    %c0_2 = arith.constant 0 : index
    %0 = vector.load %arg2[%c0, %c0_0, %c0_1, %c0_2] : memref<1x1x4x324xf32, #tpu.memory_space<vmem>>, vector<1x1x4x324xf32>
    %1 = vector.shape_cast %0 : vector<1x1x4x324xf32> to vector<4x324xf32>
    %c0_3 = arith.constant 0 : index
    %c0_4 = arith.constant 0 : index
    %c0_5 = arith.constant 0 : index
    %c0_6 = arith.constant 0 : index
    %c0_7 = arith.constant 0 : index
    %2 = vector.load %arg3[%c0_3, %c0_4, %c0_5, %c0_6, %c0_7] : memref<1x4x1x1x324xf32, #tpu.memory_space<vmem>>, vector<1x4x1x1x324xf32>
    %3 = vector.shape_cast %2 : vector<1x4x1x1x324xf32> to vector<4x324xf32>
    %c0_8 = arith.constant 0 : index
    %c0_9 = arith.constant 0 : index
    %4 = vector.load %arg4[%c0_8, %c0_9] : memref<4x1xf32, #tpu.memory_space<vmem>>, vector<4x1xf32>
    %5 = vector.broadcast %4 : vector<4x1xf32> to vector<4x324xf32>
    %6 = arith.mulf %1, %5 : vector<4x324xf32>
    %7 = arith.addf %3, %6 : vector<4x324xf32>
    %c0_10 = arith.constant 0 : index
    %c0_11 = arith.constant 0 : index
    %8 = vector.load %arg5[%c0_10, %c0_11] : memref<4x1xf32, #tpu.memory_space<vmem>>, vector<4x1xf32>
    %9 = vector.broadcast %8 : vector<4x1xf32> to vector<4x324xf32>
    %10 = arith.addf %7, %9 : vector<4x324xf32>
    %c0_12 = arith.constant 0 : index
    %c0_13 = arith.constant 0 : index
    %c0_14 = arith.constant 0 : index
    %c0_15 = arith.constant 0 : index
    %c0_16 = arith.constant 0 : index
    %11 = vector.load %arg6[%c0_12, %c0_13, %c0_14, %c0_15, %c0_16] : memref<1x4x1x1x324xf32, #tpu.memory_space<vmem>>, vector<1x4x1x1x324xf32>
    %12 = vector.shape_cast %11 : vector<1x4x1x1x324xf32> to vector<4x324xf32>
    %13 = vector.shape_cast %10 : vector<4x324xf32> to vector<1x4x1x1x324xf32>
    tpu.vector_store %arg6[%c0_12, %c0_13, %c0_14, %c0_15, %c0_16], %13 {strides = array<i32>} : memref<1x4x1x1x324xf32, #tpu.memory_space<vmem>>, vector<1x4x1x1x324xf32>,
    return
  }
  func.func @transform_0(%arg0: i32, %arg1: i32) -> (i32, i32, i32, i32) {
    %c0_i32 = arith.constant 0 : i32
    %c0_i32_0 = arith.constant 0 : i32
    %c0_i32_1 = arith.constant 0 : i32
    return %arg0, %arg1, %c0_i32, %c0_i32_0 : i32, i32, i32, i32
  }
  func.func @transform_1(%arg0: i32, %arg1: i32) -> (i32, i32, i32, i32, i32) {
    %c0_i32 = arith.constant 0 : i32
    %c0_i32_0 = arith.constant 0 : i32
    %c0_i32_1 = arith.constant 0 : i32
    %c0_i32_2 = arith.constant 0 : i32
    return %arg0, %c0_i32, %arg1, %c0_i32_0, %c0_i32_1 : i32, i32, i32, i32, i32
  }
  func.func @transform_2(%arg0: i32, %arg1: i32) -> (i32, i32) {
    %c0_i32 = arith.constant 0 : i32
    %c0_i32_0 = arith.constant 0 : i32
    %c0_i32_1 = arith.constant 0 : i32
    return %c0_i32, %c0_i32_0 : i32, i32
  }
  func.func @transform_3(%arg0: i32, %arg1: i32) -> (i32, i32) {
    %c0_i32 = arith.constant 0 : i32
    %c0_i32_0 = arith.constant 0 : i32
    %c0_i32_1 = arith.constant 0 : i32
    return %c0_i32, %c0_i32_0 : i32, i32
  }
  func.func @transform_4(%arg0: i32, %arg1: i32) -> (i32, i32, i32, i32, i32) {
    %c0_i32 = arith.constant 0 : i32
    %c0_i32_0 = arith.constant 0 : i32
    %c0_i32_1 = arith.constant 0 : i32
    %c0_i32_2 = arith.constant 0 : i32
    return %arg0, %c0_i32, %arg1, %c0_i32_0, %c0_i32_1 : i32, i32, i32, i32, i32
  }
}

</mosaic_0001>

<bundles_post_ra>
// kernel: residual_block_pallas.5
= control target key start
LH: loop header
LB: loop body
LE: loop exit
PB: predicated region body
PF: predicated region fallthrough
CT: control target
= control target key end

     0   :  { %s963_s0 = inlined_call_operand.vmem [shape: f32[2,8,4,324], index: 0, kind: input, shape index: {}]   ;;  %s964_s1 = inlined_call_operand.vmem [shape: f32[4,1], index: 1, kind: input, shape index: {}]   ;;  %s965_s2 = inlined_call_operand.vmem [shape: f32[4,1], index: 2, kind: input, shape index: {}]   ;;  %s966_s3 = inlined_call_operand.<no memory space> [shape: f32[1,1], index: 3, kind: input, shape index: {}]   ;;  %s967_s4 = inlined_call_operand.vmem [shape: f32[1,324], index: 4, kind: input, shape index: {}]   ;;  %s968_s5 = inlined_call_operand.vmem [shape: bf16[2,4,10,1,362], index: 5, kind: output, shape index: {}]  }
   0x1   :  { %v10_v0 = vstv %s966_s3 }
   0x2   :  { %11 = vst [vmem:[#allocation2] sm:$0x1] %v10_v0 }
   0x3   :  { %s799_s20 = smov 0   ;;  %s801_s21 = smov 0  }
   0x4   :  { %s803_s22 = smov 0   ;;  %s805_s23 = smov 0  }
   0x5   :  { %s807_s24 = smov 0   ;;  %s809_s25 = smov 0  }
   0x6   :  { %s811_s26 = smov 0  }
   0x7 LB: > { %s26_s3 = sadd.s32 1, %s752_s24  ;;  %s29_s27 = sadd.s32 1, %s756_s25  ;;  %s760_s26 = sphi %s811_s26, %s17_s26   ;;  %s756_s25 = sphi %s809_s25, %s981_s25   ;;  %s752_s24 = sphi %s807_s24, %s980_s24   ;;  %s748_s23 = sphi %s805_s23, %s979_s23   ;;  %s744_s22 = sphi %s803_s22, %s978_s22   ;;  %s740_s21 = sphi %s801_s21, %s977_s21   ;;  %s736_s20 = sphi %s799_s20, %s976_s20  }
   0x8   : > { %p27_p0 = scmp.ge.s32.totalorder %s26_s3, 10  ;;  %s603_s28 = sadd.s32 4294967295, %s760_s26  }
   0x9   : > { %p170_p1 = scmp.ne.s32.totalorder %s740_s21, %s736_s20  ;;  %p171_p2 = scmp.eq.s32.totalorder %s603_s28, 19 }
   0xa   : > { %s983_s3 = smov (%p27_p0, %s26_s3), 0  ;;  %s985_s27 = smov (!%p27_p0, %s29_s27), %s756_s25 }
   0xb   : > { %s156_s29 = ssub.s32 %s752_s24, %s983_s3  ;;  %p31_p3 = scmp.ge.s32.totalorder %s985_s27, 2 }
   0xc   : > { %p619_p4 = scmp.ge.s32.totalorder %s760_s26, 1  ;;  %p845_p5 = por %p171_p2, %p170_p1 }
   0xd   : > { %p229_p6 = scmp.lt.s32.totalorder %s760_s26, 21  ;;  %s987_s27 = smov (%p31_p3, %s985_s27), 0 }
   0xe   : > { %s155_s6 = ssub.s32 %s756_s25, %s987_s27  ;;  %s160_s8 = sadd.s32 1, %s740_s21 }
   0xf   : > { %p230_p7 = pnand %p619_p4, %p229_p6  ;;  %s157_s7 = sor.u32 %s156_s29, %s155_s6 }
  0x10   : > { %p158_p8 = scmp.eq.s32.totalorder %s157_s7, 0  ;;  %s262_s10 = sand.u32 (!%p230_p7), 1, %s736_s20   ;;  %vm285_vm0 = vcmask (!%p230_p7), 1040384   ;;  %vm286_vm1 = vsmask.f32 (!%p230_p7), 256  ;;  %vm288_vm2 = vcmask (!%p230_p7), 1041409  }
  0x11   : > { %233 = sbr.rel (%p230_p7) target bundleno = 316 (0x13c), region = 40  ;;  %s620_s11 = sadd.s32 (!%p230_p7), 4294967295, %s744_s22  ;;  %vm861_vm3 = vmand (!%p230_p7), %vm285_vm0, %vm286_vm1  ;;  %vm289_vm4 = vsmask.f32 (!%p230_p7), 1280  ;;  %vm292_vm5 = vcmask (!%p230_p7), 862210  }
  0x12   : > { %s856_s9 = scalar_select %p158_p8, %s740_s21, %s160_s8  }
  0x13   : > { %s639_s12 = smul.u32 (!%p230_p7), 12, %s262_s10  ;;  %p266_p9 = scmp.gt.s32.totalorder (!%p230_p7), %s620_s11, 0  ;;  %vm866_vm6 = vmand (!%p230_p7), %vm288_vm2, %vm289_vm4  ;;  %vm293_vm7 = vsmask.f32 (!%p230_p7), 2304 }
  0x14   : > { %p621_p10 = scmp.lt.s32.totalorder (!%p230_p7), %s620_s11, 7  ;;  %p270_p11 = scmp.lt.s32.totalorder (!%p230_p7), %s748_s23, 1  ;;  %vm291_vm8 = vmor (!%p230_p7), %vm866_vm6, %vm861_vm3 }
  0x15   : > { %p308_p12 = scmp.gt.s32.totalorder (!%p230_p7), %s744_s22, 0  ;;  %vm294_vm9 = vmand (!%p230_p7), %vm292_vm5, %vm293_vm7  ;;  %s876_s14 = scalar_lea.vmem (!%p230_p7), [#allocation3], %s639_s12 }
  0x16   : > { %v296_v3 = vld [vmem:[%s876_s14] sm:$0x7] (!%p230_p7)  ;;  %v299_v4 = vld [vmem:[%s876_s14 + $0x3] sm:$0x7] (!%p230_p7)  ;;  %vm295_vm10 = vmor (!%p230_p7), %vm294_vm9, %vm291_vm8  ;;  %p309_p13 = scmp.lt.s32.totalorder (!%p230_p7), %s744_s22, 9 }
  0x17   : > { %v302_v5 = vld [vmem:[%s876_s14 + $0x6] sm:$0x7] (!%p230_p7)  ;;  %v305_v6 = vld [vmem:[%s876_s14 + $0x9] sm:$0x7] (!%p230_p7)  ;;  %v297_v7 = vsel (!%p230_p7), %vm295_vm10, 0, %v296_v3  ;;  %v300_v8 = vsel (!%p230_p7), %vm295_vm10, 0, %v299_v4 }
  0x18   : > { %s267_s13 = scalar_select %p266_p9, %s620_s11, 0  ;;  %v303_v9 = vsel %vm295_vm10, 0, %v302_v5  ;;  %v306_v10 = vsel %vm295_vm10, 0, %v305_v6  ;;  %298 = vst [vmem:[%s876_s14] sm:$0x7] %v297_v7  ;;  %301 = vst [vmem:[%s876_s14 + $0x3] sm:$0x7] %v300_v8 }
  0x19   : > { %s271_s15 = scalar_select %p270_p11, %s748_s23, 1  ;;  %304 = vst [vmem:[%s876_s14 + $0x6] sm:$0x7] %v303_v9  ;;  %307 = vst [vmem:[%s876_s14 + $0x9] sm:$0x7] %v306_v10 }
  0x1a   : > { %s989_s13 = smov (!%p621_p10, %s267_s13), 7  ;;  %p310_p1 = pnand %p309_p13, %p308_p12 }
  0x1b   : > { %p272_p0 = scmp.lt.s32.totalorder %s989_s13, 7  ;;  %s641_s16 = smul.u32 24, %s271_s15  ;;  %v316_v11 = vld [vmem:[%s964_s1] sm:$0xf] (!%p310_p1)  ;;  %v762_v12 = vmov (!%p310_p1), 0   ;;  %v324_v17 = vlaneseq (!%p310_p1)  ;;  %vm450_vm13 = vcmask (!%p310_p1), 1040536  }
  0x1c   : > { %313 = sbr.rel (%p310_p1) target bundleno = 308 (0x134), region = 44  ;;  %704 = vset.pattern.permute.xlu0 (!%p310_p1), %v762_v12  ;;  %705 = vset.pattern.permute.xlu1 (!%p310_p1), %v762_v12  ;;  %v627_v13 = vld [vmem:[#allocation2] ss:$0 sm:$0xff] (!%p310_p1)  ;;  %v763_v15 = vmov (!%p310_p1), 839922192   ;;  %vm451_vm14 = vmand (!%p310_p1), %vm450_vm13, %vm286_vm1  ;;  %vm453_vm15 = vcmask (!%p310_p1), 706562  }
  0x1d   : > { %s991_s13 = smov (!%p272_p0, %s989_s13), 7  ;;  %319 = vperm.xlu0 (!%p310_p1), %704, %v316_v11   ;;  %355 = vperm.xlu1 (!%p310_p1), %705, %v627_v13   ;;  %v331_v14 = vld [vmem:[%s965_s2] sm:$0xf] (!%p310_p1)  ;;  %v322_v16 = vunpack.c.l.s4 (!%p310_p1), %v763_v15  ;;  %v325_v19 = vshrl.u32 (!%p310_p1), %v324_v17, 7  ;;  %v764_v35 = vmov (!%p310_p1), 1966171168   ;;  %vm452_vm0 = vmor (!%p310_p1), %vm866_vm6, %vm451_vm14 }
  0x1e   : > { %s640_s17 = smul.u32 3, %s991_s13  ;;  %v362_v25 = vld [vmem:[%s967_s4] sm:$0x7] (!%p310_p1)  ;;  %v392_v36 = vunpack.c.l.s4 (!%p310_p1), %v764_v35  ;;  %s765_s13 = smov (!%p310_p1), 19   ;;  %vm454_vm2 = vmand (!%p310_p1), %vm453_vm15, %vm293_vm7  ;;  %vm441_vm3 = vcmask (!%p310_p1), 154624  }
  0x1f   : > { %v323_v18 = vunpack.c.0.s8 (!%p310_p1), %v322_v16  ;;  %v366_v22 = vsub.s32 (!%p310_p1), 0, %v325_v19  ;;  %v370_v23 = vsub.s32 (!%p310_p1), 1, %v325_v19  ;;  %v374_v31 = vsub.s32 (!%p310_p1), 2, %v325_v19  ;;  %vm907_vm4 = vmor (!%p310_p1), %vm454_vm2, %vm452_vm0  ;;  %v456_v4 = vld [vmem:[%s876_s14] sm:$0x7] (!%p310_p1) }
  0x20   : > { %s276_s18 = sadd.s32 %s641_s16, %s640_s17  ;;  %v393_v44 = vunpack.c.0.s8 (!%p310_p1), %v392_v36  ;;  %v459_v8 = vld [vmem:[%s876_s14 + $0x3] sm:$0x7] (!%p310_p1)  ;;  %v462_v12 = vld [vmem:[%s876_s14 + $0x6] sm:$0x7] (!%p310_p1)  ;;  %v465_v17 = vld [vmem:[%s876_s14 + $0x9] sm:$0x7] (!%p310_p1) }
  0x21   : > { %s626_s19 = sshll.u32 %s276_s18, 2  ;;  %334 = vperm.xlu0 (!%p310_p1), %704, %v331_v14   ;;  %v326_v20 = vsub.s32 (!%p310_p1), %v323_v18, %v325_v19  ;;  %v367_v29 = vrot.slane (!%p310_p1), %v362_v25, %v366_v22  ;;  %v371_v30 = vrot.slane (!%p310_p1), %v362_v25, %v370_v23  ;;  %v375_v40 = vrot.slane (!%p310_p1), %v362_v25, %v374_v31 }
  0x22   : > { %s278_s29 = scalar_lea.vmem %s963_s0, %s626_s19  ;;  %v396_v49 = vsub.s32 (!%p310_p1), %v393_v44, %v325_v19 }
  0x23   : > { %v314_v26 = vld [vmem:[%s278_s29] sm:$0xff]  ;;  %v315_v27 = vld [vmem:[%s278_s29 + $0x8] sm:$0xf]  ;;  %v377_v41 = vcombine.low %v367_v29, %v371_v30 }
  0x9c   : > { %v320_v21 = vpop.permute.xlu0 %319  ;;  %v356_v37 = vpop.permute.xlu1 %355 }
  0x9d   : > { %v327_v24 = vrot.slane %v320_v21, %v326_v20 }
  0x9f   : > { %v329_v32 = vmul.f32 %v327_v24, %v314_v26  ;;  %v330_v33 = vmul.f32 %v327_v24, %v315_v27 }
  0xa0   : > { %v335_v28 = vpop.permute.xlu0 %334 }
  0xa1   : > { %v342_v34 = vrot.slane %v335_v28, %v326_v20 }
  0xa3   : > { %v344_v38 = vadd.f32 %v342_v34, %v329_v32  ;;  %v345_v39 = vadd.f32 %v342_v34, %v330_v33 }
  0xa5   : > { %vm346_vm11 = vcmp.gt.f32.partialorder %v344_v38, 0.0  ;;  %vm347_vm12 = vcmp.gt.f32.partialorder %v345_v39, 0.0  ;;  %v358_v42 = vmul.f32 %v356_v37, %v344_v38  ;;  %v359_v43 = vmul.f32 %v356_v37, %v345_v39 }
  0xa7   : > { %v360_v45 = vsel %vm346_vm11, %v344_v38, %v358_v42  ;;  %v361_v46 = vsel %vm347_vm12, %v345_v39, %v359_v43 }
  0xa8   : > { %v379_v47 = vmul.f32 %v377_v41, %v360_v45  ;;  %v380_v48 = vmul.f32 %v375_v40, %v361_v46 }
  0xaa   : > { %v382_v50 = vcombine.high %v379_v47, %v379_v47  ;;  %v386_v51 = vpack.c.bf16 %v380_v48, %v380_v48 }
  0xac   : > { %v628_v52 = vpack.c.bf16 %v382_v50, %v379_v47  ;;  %v404_v53 = vrot.slane %v386_v51, %v396_v49 }
  0xae   : > { %v397_v54 = vrot.slane %v628_v52, %v396_v49 }
  0xb0   : > { %v405_v55 = vcombine.low %v397_v54, %v404_v53  ;;  %v406_v56 = vcombine.high %v397_v54, %v404_v53 }
  0xb2   : > { %v413_v57 = vrot.slane %v405_v55, %v396_v49  ;;  %v420_v58 = vrot.slane %v406_v56, %v396_v49 }
  0xb4   : > { %v629_v59 = vpack.i.b16 %v413_v57, %v413_v57  ;;  %v422_v60 = vunpack.i.h.s16 %v413_v57  ;;  %v424_v62 = vunpack.i.h.s16 %v420_v58  ;;  %v630_v63 = vpack.i.b16 %v420_v58, %v420_v58 }
  0xb6   : > { %429 = vrot.lane.b32.xlu1 %v629_v59, %s765_s13  ;;  %v426_v61 = vpack.i.b16 %v422_v60, %v422_v60  ;;  %v428_v0 = vpack.i.b16 %v424_v62, %v424_v62 }
  0xb8   : > { %431 = vrot.lane.b32.xlu0 %v426_v61, %s765_s13 }
  0xba   : > { %433 = vrot.lane.b32.xlu1 %v630_v63, %s765_s13 }
  0xbc   : > { %435 = vrot.lane.b32.xlu0 %v428_v0, %s765_s13 }
 0x128   : > { %v430_v1 = vpop.permute.xlu1 %429 }
 0x129   : > { %v437_v5 = vrot.slane %v430_v1, 7 }
 0x12a   : > { %v432_v6 = vpop.permute.xlu0 %431 }
 0x12b   : > { %v442_v7 = vsel %vm441_vm3, %v437_v5, %v430_v1  ;;  %v438_v2 = vrot.slane %v432_v6, 7 }
 0x12c   : > { %v457_v9 = vsel %vm907_vm4, %v442_v7, %v456_v4  ;;  %v434_v10 = vpop.permute.xlu1 %433 }
 0x12d   : > { %458 = vst [vmem:[%s876_s14] sm:$0x7] %v457_v9  ;;  %v443_v11 = vsel %vm441_vm3, %v438_v2, %v432_v6  ;;  %v439_v13 = vrot.slane %v434_v10, 7 }
 0x12e   : > { %v460_v14 = vsel %vm907_vm4, %v443_v11, %v459_v8  ;;  %v436_v15 = vpop.permute.xlu0 %435 }
 0x12f   : > { %461 = vst [vmem:[%s876_s14 + $0x3] sm:$0x7] %v460_v14  ;;  %v444_v16 = vsel %vm441_vm3, %v439_v13, %v434_v10  ;;  %v440_v18 = vrot.slane %v436_v15, 7 }
 0x130   : > { %v463_v19 = vsel %vm907_vm4, %v444_v16, %v462_v12 }
 0x131   : > { %464 = vst [vmem:[%s876_s14 + $0x6] sm:$0x7] %v463_v19  ;;  %v445_v20 = vsel %vm441_vm3, %v440_v18, %v436_v15 }
 0x132   : > { %v466_v21 = vsel %vm907_vm4, %v445_v20, %v465_v17 }
 0x133   : > { %467 = vst [vmem:[%s876_s14 + $0x9] sm:$0x7] %v466_v21 }
 0x134 PF: > { %474 = sbr.rel (!%p845_p5) target bundleno = 316 (0x13c), region = 48  ;;  %v494_v22 = vld [vmem:[%s876_s14] sm:$0x7] (%p845_p5) }
 0x135   : > { %s642_s15 = smul.u32 (%p845_p5), 3, %s744_s22 }
 0x136   : > { %s643_s16 = smul.u32 (%p845_p5), 120, %s748_s23  ;;  %v496_v23 = vld [vmem:[%s876_s14 + $0x3] sm:$0x7] (%p845_p5) }
 0x138   : > { %v498_v24 = vld [vmem:[%s876_s14 + $0x6] sm:$0x7] (%p845_p5)  ;;  %s477_s17 = sadd.s32 (%p845_p5), %s643_s16, %s642_s15 }
 0x139   : > { %s478_s20 = scalar_lea.vmem (%p845_p5), %s968_s5, %s477_s17 }
 0x13a   : > { %v500_v25 = vld [vmem:[%s876_s14 + $0x9] sm:$0x7] (%p845_p5)  ;;  %495 = vst [vmem:[%s478_s20] sm:$0x7] (%p845_p5), %v494_v22  ;;  %497 = vst [vmem:[%s478_s20 + $0x1e] sm:$0x7] (%p845_p5), %v496_v23 }
 0x13b   : > { %499 = vst [vmem:[%s478_s20 + $0x3c] sm:$0x7] %v498_v24  ;;  %501 = vst [vmem:[%s478_s20 + $0x5a] sm:$0x7] %v500_v25 }
 0x13c PF: > { %s17_s26 = sadd.s32 1, %s760_s26   ;;  %s976_s20 = smov %s740_s21 }
 0x13d   : > { %p14_p2 = scmp.ge.s32.totalorder %s17_s26, 22   ;;  %s977_s21 = smov %s856_s9 }
 0x13e   : > { %s978_s22 = smov %s752_s24  ;;  %s979_s23 = smov %s756_s25 }
 0x13f   : > { %s980_s24 = smov %s983_s3  ;;  %s981_s25 = smov %s987_s27 }
 0x140   :  { %16 = sbr.rel (!%p14_p2) target bundleno = 7 (0x7), region = 115 }

// kernel: residual_block_pallas.4
= control target key start
LH: loop header
LB: loop body
LE: loop exit
PB: predicated region body
PF: predicated region fallthrough
CT: control target
= control target key end

     0   :  { %s5603_s0 = inlined_call_operand.vmem [shape: bf16[2,4,10,1,362], index: 0, kind: input, shape index: {}, may-alias: {0,1,2}]   ;;  %s5604_s1 = inlined_call_operand.vmem [shape: bf16[2,4,10,1,362], index: 1, kind: input, shape index: {}, may-alias: {0,1,2}]   ;;  %s5605_s2 = inlined_call_operand.vmem [shape: bf16[2,4,10,1,362], index: 2, kind: input, shape index: {}, may-alias: {0,1,2}]   ;;  %s5606_s3 = inlined_call_operand.vmem [shape: bf16[27,4,4], index: 3, kind: input, shape index: {}]   ;;  %s5607_s4 = inlined_call_operand.vmem [shape: f32[1,324], index: 4, kind: input, shape index: {}]   ;;  %s5608_s5 = inlined_call_operand.vmem [shape: f32[2,8,4,324], index: 5, kind: output, shape index: {0}]   ;;  %s5609_s6 = inlined_call_operand.vmem [shape: f32[4,1], index: 6, kind: output, shape index: {1}]   ;;  %s5610_s7 = inlined_call_operand.vmem [shape: f32[4,1], index: 7, kind: output, shape index: {2}]  }
   0x1   :  { %5616 = sst [smem:[#allocation7_spill]] %s5603_s0 }
   0x2   :  { %5617 = sst [smem:[#allocation8_spill]] %s5606_s3 }
   0x3   :  { %5618 = sst [smem:[#allocation9_spill]] %s5607_s4 }
   0x4   :  { %5619 = sst [smem:[#allocation10_spill]] %s5608_s5 }
   0x5   :  { %5620 = sst [smem:[#allocation11_spill]] %s5609_s6 }
   0x6   :  { %5621 = sst [smem:[#allocation12_spill]] %s5610_s7 }
   0x7   :  { %s4779_s24 = smov 0   ;;  %s4781_s25 = smov 0  }
   0x8   :  { %s4783_s26 = smov 0   ;;  %s4785_s27 = smov 0  }
   0x9   :  { %s4787_s28 = smov 0   ;;  %s4789_s29 = smov 0  }
   0xa   :  { %s4791_s30 = smov 0   ;;  %s4793_s8 = smov 0  }
   0xb   :  { %s4795_s9 = smov 0   ;;  %s4797_s10 = smov 0  }
   0xc   :  { %s4799_s11 = smov 0  }
   0xd LB: > { %5622 = sst [smem:[#allocation5_spill]] %s4708_s30  ;;  %s27_s12 = sadd.s32 1, %s4716_s9  ;;  %s4724_s11 = sphi %s4799_s11, %s18_s11   ;;  %s4720_s10 = sphi %s4797_s10, %s5647_s10   ;;  %s4716_s9 = sphi %s4795_s9, %s5646_s9   ;;  %s4712_s8 = sphi %s4793_s8, %s5645_s8   ;;  %s4708_s30 = sphi %s4791_s30, %s5644_s30   ;;  %s4704_s29 = sphi %s4789_s29, %s5643_s29   ;;  %s4700_s28 = sphi %s4787_s28, %s5642_s28   ;;  %s4696_s27 = sphi %s4785_s27, %s5641_s27   ;;  %s4692_s26 = sphi %s4783_s26, %s5640_s26   ;;  %s4688_s25 = sphi %s4781_s25, %s5639_s25   ;;  %s4684_s24 = sphi %s4779_s24, %s5638_s24  }
   0xe   : > { %s30_s13 = sadd.s32 1, %s4720_s10  ;;  %p28_p0 = scmp.ge.s32.totalorder %s27_s12, 8 }
   0xf   : > { %s39_s14 = sadd.s32 1, %s4704_s29  ;;  %p46_p1 = scmp.ne.s32.totalorder %s4704_s29, %s4700_s28 }
  0x10   : > { %p47_p2 = scmp.eq.s32.totalorder %s4724_s11, 0  ;;  %s5649_s13 = smov (!%p28_p0, %s30_s13), %s4720_s10 }
  0x11   : > { %s4840_s15 = scalar_select %p28_p0, 0, %s27_s12  }
  0x12   : > { %p4847_p3 = por %p47_p2, %p46_p1  ;;  %p32_p4 = scmp.ge.s32.totalorder %s5649_s13, 2 }
  0x13   : > { %s35_s16 = ssub.s32 %s4716_s9, %s4840_s15  ;;  %s63_s18 = sadd.s32 1, %s4840_s15 }
  0x14   : > { %s65_s19 = ssub.s32 %s27_s12, %s63_s18  ;;  %s69_s20 = sadd.s32 1, %s4696_s27 }
  0x15   : > { %s5651_s13 = smov (%p32_p4, %s5649_s13), 0  ;;  %p76_p5 = scmp.ne.s32.totalorder %s4696_s27, %s4692_s26 }
  0x16   : > { %5624 = sst [smem:[#allocation6_spill]] %s5651_s13  ;;  %s92_s21 = sadd.s32 2, %s4716_s9 }
  0x17   : > { %s34_s22 = ssub.s32 %s4720_s10, %s5651_s13  ;;  %s93_s23 = sadd.s32 2, %s4840_s15 }
  0x18   : > { %s36_s4 = sor.u32 %s35_s16, %s34_s22  ;;  %s66_s3 = sor.u32 %s65_s19, %s34_s22 }
  0x19   : > { %p37_p6 = scmp.eq.s32.totalorder %s36_s4, 0  ;;  %p67_p7 = scmp.eq.s32.totalorder %s66_s3, 0 }
  0x1a   : > { %p4863_p8 = por %p76_p5, %p47_p2  ;;  %s95_s18 = ssub.s32 %s92_s21, %s93_s23 }
  0x1b   : > { %s4868_s7 = scalar_select %p37_p6, %s4704_s29, %s39_s14  }
  0x1c   : > { %s4871_s6 = scalar_select %p67_p7, %s4696_s27, %s69_s20  }
  0x1d   : > { %s96_s5 = sor.u32 %s95_s18, %s34_s22  ;;  %s99_s30 = sadd.s32 1, %s4688_s25 }
  0x1e   : > { %p97_p9 = scmp.eq.s32.totalorder %s96_s5, 0  ;;  %p106_p10 = scmp.ne.s32.totalorder %s4688_s25, %s4684_s24 }
  0x1f   : > { %p3971_p12 = scmp.ge.s32.totalorder %s4724_s11, 16 }
  0x20   : > { %s4877_s13 = scalar_select %p97_p9, %s4688_s25, %s99_s30  }
  0x21   : > { %p4881_p11 = por %p106_p10, %p47_p2  ;;  %250 = sbr.rel (%p3971_p12) target bundleno = 74 (0x4a), region = 24 }
  0x28   : > { %253 = sbr.rel (!%p4847_p3) target bundleno = 52 (0x34), region = 28  ;;  %s255_s3 = sand.u32 (%p4847_p3), 1, %s4704_s29  }
  0x29   : > { %s4528_s14 = smul.u32 (%p4847_p3), 3, %s4716_s9  ;;  %s5627_s0 = sld [smem:[#allocation7_spill]] (%p4847_p3) }
  0x2a   : > { %s4527_s5 = smul.u32 (%p4847_p3), 12, %s255_s3 }
  0x2b   : > { %s4529_s16 = smul.u32 (%p4847_p3), 120, %s4720_s10 }
  0x2c   : > { %s257_s22 = scalar_lea.vmem (%p4847_p3), [#allocation2], %s4527_s5 }
  0x2d   : > { %s260_s30 = sadd.s32 (%p4847_p3), %s4529_s16, %s4528_s14 }
  0x2f   : > { %s261_s21 = scalar_lea.vmem %s5627_s0, %s260_s30 }
  0x30   : > { %v277_v0 = vld [vmem:[%s261_s21] sm:$0x7]  ;;  %v281_v2 = vld [vmem:[%s261_s21 + $0x3c] sm:$0x7] }
  0x31   : > { %v279_v1 = vld [vmem:[%s261_s21 + $0x1e] sm:$0x7]  ;;  %278 = vst [vmem:[%s257_s22] sm:$0x7] %v277_v0  ;;  %282 = vst [vmem:[%s257_s22 + $0x6] sm:$0x7] %v281_v2 }
  0x32   : > { %280 = vst [vmem:[%s257_s22 + $0x3] sm:$0x7] %v279_v1  ;;  %v283_v3 = vld [vmem:[%s261_s21 + $0x5a] sm:$0x7] }
  0x33   : > { %284 = vst [vmem:[%s257_s22 + $0x9] sm:$0x7] %v283_v3 }
  0x34 PF: > { %315 = sbr.rel (!%p4863_p8) target bundleno = 63 (0x3f), region = 69  ;;  %s317_s17 = sand.u32 (%p4863_p8), 1, %s4696_s27  }
  0x35   : > { %s3869_s23 = smul.u32 (%p4863_p8), 3, %s4716_s9 }
  0x36   : > { %s4530_s18 = smul.u32 (%p4863_p8), 12, %s317_s17 }
  0x37   : > { %s3870_s3 = smul.u32 (%p4863_p8), 120, %s4720_s10 }
  0x38   : > { %s319_s19 = scalar_lea.vmem (%p4863_p8), [#allocation3], %s4530_s18 }
  0x39   : > { %s3871_s14 = sadd.s32 (%p4863_p8), %s3870_s3, %s3869_s23 }
  0x3a   : > { %s3872_s5 = scalar_lea.vmem (%p4863_p8), %s5604_s1, %s3871_s14 }
  0x3b   : > { %v3972_v4 = vld [vmem:[%s3872_s5 + $0x3] sm:$0x7]  ;;  %v3974_v6 = vld [vmem:[%s3872_s5 + $0x3f] sm:$0x7] }
  0x3c   : > { %v3973_v5 = vld [vmem:[%s3872_s5 + $0x21] sm:$0x7]  ;;  %341 = vst [vmem:[%s319_s19] sm:$0x7] %v3972_v4  ;;  %345 = vst [vmem:[%s319_s19 + $0x6] sm:$0x7] %v3974_v6 }
  0x3d   : > { %343 = vst [vmem:[%s319_s19 + $0x3] sm:$0x7] %v3973_v5  ;;  %v3975_v7 = vld [vmem:[%s3872_s5 + $0x5d] sm:$0x7] }
  0x3e   : > { %347 = vst [vmem:[%s319_s19 + $0x9] sm:$0x7] %v3975_v7 }
  0x3f PF: > { %378 = sbr.rel (!%p4881_p11) target bundleno = 74 (0x4a), region = 110  ;;  %s380_s12 = sand.u32 (%p4881_p11), 1, %s4688_s25  }
  0x40   : > { %s3876_s20 = smul.u32 (%p4881_p11), 3, %s4716_s9 }
  0x41   : > { %s4531_s21 = smul.u32 (%p4881_p11), 12, %s380_s12 }
  0x42   : > { %s3877_s22 = smul.u32 (%p4881_p11), 120, %s4720_s10 }
  0x43   : > { %s382_s14 = scalar_lea.vmem (%p4881_p11), [#allocation4], %s4531_s21 }
  0x44   : > { %s3878_s17 = sadd.s32 (%p4881_p11), %s3877_s22, %s3876_s20 }
  0x45   : > { %s3879_s18 = scalar_lea.vmem (%p4881_p11), %s5605_s2, %s3878_s17 }
  0x46   : > { %v3976_v8 = vld [vmem:[%s3879_s18 + $0x6] sm:$0x7]  ;;  %v3978_v10 = vld [vmem:[%s3879_s18 + $0x42] sm:$0x7] }
  0x47   : > { %v3977_v9 = vld [vmem:[%s3879_s18 + $0x24] sm:$0x7]  ;;  %404 = vst [vmem:[%s382_s14] sm:$0x7] %v3976_v8  ;;  %408 = vst [vmem:[%s382_s14 + $0x6] sm:$0x7] %v3978_v10 }
  0x48   : > { %406 = vst [vmem:[%s382_s14 + $0x3] sm:$0x7] %v3977_v9  ;;  %v3979_v11 = vld [vmem:[%s3879_s18 + $0x60] sm:$0x7] }
  0x49   : > { %410 = vst [vmem:[%s382_s14 + $0x9] sm:$0x7] %v3979_v11 }
  0x4a PF: > { %p3980_p13 = scmp.ge.s32.totalorder %s4724_s11, 1  ;;  %p440_p0 = scmp.lt.s32.totalorder %s4724_s11, 17 }
  0x4c   : > { %p441_p1 = pnand %p3980_p13, %p440_p0 }
  0x4d   : > { %s5628_s4 = sld [smem:[#allocation5_spill]] (!%p441_p1)  ;;  %s447_s16 = sand.u32 (!%p441_p1), 1, %s4700_s28  }
  0x4e   : > { %444 = sbr.rel (%p441_p1) target bundleno = 918 (0x396), region = 151  ;;  %s454_s30 = sand.u32 (!%p441_p1), 1, %s4692_s26  }
  0x4f   : > { %s4532_s5 = smul.u32 (!%p441_p1), 12, %s447_s16  ;;  %s461_s19 = sand.u32 (!%p441_p1), 1, %s4684_s24  }
  0x50   : > { %s4533_s12 = smul.u32 (!%p441_p1), 12, %s454_s30  ;;  %p506_p2 = scmp.lt.s32.totalorder (!%p441_p1), %s4712_s8, 1 }
  0x51   : > { %s4534_s20 = smul.u32 (!%p441_p1), 12, %s461_s19  ;;  %p516_p4 = scmp.eq.s32.totalorder (!%p441_p1), %s4712_s8, 0 }
  0x52   : > { %s5629_s0 = sld [smem:[#allocation10_spill]] (!%p441_p1)  ;;  %s449_s26 = scalar_lea.vmem (!%p441_p1), [#allocation2], %s4532_s5 }
  0x53   : > { %p508_p3 = scmp.lt.s32.totalorder (!%p441_p1), %s5628_s4, 7  ;;  %p517_p5 = scmp.eq.s32.totalorder (!%p441_p1), %s5628_s4, 0 }
  0x54   : > { %s4926_s24 = scalar_lea.vmem (!%p441_p1), [#allocation3], %s4533_s12  ;;  %s4928_s16 = scalar_lea.vmem (!%p441_p1), [#allocation4], %s4534_s20 }
  0x55   : > { %s5653_s8 = smov (!%p506_p2, %s4712_s8), 1  ;;  %p518_p6 = pnand %p517_p5, %p516_p4 }
  0x56   : > { %s509_s21 = scalar_select %p508_p3, %s5628_s4, 7 }
  0x57   : > { %s4536_s22 = smul.u32 24, %s5653_s8  ;;  %vm522_vm0 = vcmask (!%p518_p6), 3072   ;;  %v4726_v12 = vmov (!%p518_p6), 0.0   ;;  %s5630_s4 = sld [smem:[#allocation11_spill]] (!%p518_p6) }
  0x58   : > { %s4535_s17 = smul.u32 3, %s509_s21 }
  0x59   : > { %521 = sbr.rel (%p518_p6) target bundleno = 97 (0x61), region = 167 }
  0x5a   : > { %s512_s23 = sadd.s32 %s4536_s22, %s4535_s17  ;;  %s5631_s22 = sld [smem:[#allocation12_spill]] (!%p518_p6) }
  0x5b   : > { %s3981_s3 = sshll.u32 %s512_s23, 2 }
  0x5c   : > { %s4924_s28 = scalar_lea.vmem %s5629_s0, %s3981_s3 }
  0x5d   : > { %523 = vst.msk [vmem:[%s5630_s4] sm:$0xf] (!%p518_p6), %vm522_vm0, %v4726_v12 }
  0x60   : > { %524 = vst.msk [vmem:[%s5631_s22] sm:$0xf] %vm522_vm0, %v4726_v12 }
  0x61 PF: > { %v555_v13 = vlaneseq  ;;  %v3983_v14 = vld.sshfl [vmem:[%s449_s26] sm:$0x13 pattern:$0x75316420]  ;;  %v4727_v16 = vmov 1966171168  }
  0x62   : > { %v3984_v15 = vld.sshfl [vmem:[%s449_s26 + $0x3] sm:$0x13 pattern:$0x75316420]  ;;  %v553_v17 = vunpack.c.l.s4 %v4727_v16  ;;  %v551_v22 = vcombine.high %v3983_v14, %v3983_v14  ;;  %vm649_vm1 = vcmask 1041409   ;;  %vm652_vm2 = vcmask 1042434  }
  0x63   : > { %v3985_v18 = vld.sshfl [vmem:[%s449_s26 + $0x6] sm:$0x13 pattern:$0x75316420]  ;;  %v4936_v19 = vshrl.u32 %v555_v13, 7  ;;  %v574_v23 = vcombine.high %v3984_v15, %v3984_v15  ;;  %vm655_vm3 = vcmask 1043459  }
  0x64   : > { %v3986_v20 = vld.sshfl [vmem:[%s449_s26 + $0x9] sm:$0x13 pattern:$0x75316420]  ;;  %v554_v21 = vunpack.c.0.s8 %v553_v17  ;;  %v597_v24 = vcombine.high %v3985_v18, %v3985_v18  ;;  %s4728_s0 = smov 127   ;;  %s4729_s5 = smov 126  }
  0x65   : > { %v620_v25 = vcombine.high %v3986_v20, %v3986_v20  ;;  %v4730_v8 = vmov 0.0   ;;  %s4731_s12 = smov 110   ;;  %vm4732_vm4 = vmmov 0   ;;  %v4733_v9 = vmov 0   ;;  %s4734_s20 = smov 109  }
  0x66   : > { %v4939_v26 = vsub.s32 %v554_v21, %v4936_v19  ;;  %4157 = vmatprep.subr.bf16.mxu1 %v4730_v8  ;;  %4159 = vmatprep.mubr.msk.bf16.mxu1 %vm4732_vm4, %v4730_v8  ;;  %v4023_v10 = vld.sshfl [vmem:[%s4926_s24 + $0x3] sm:$0x13 pattern:$0x75316420]  ;;  %s4735_s17 = smov 108   ;;  %s4736_s23 = smov 92  }
  0x67   : > { %727 = vmatprep.mubr.bf16.mxu0 %v4733_v9  ;;  %v1654_v11 = vcombine.high %v4023_v10, %v4023_v10  ;;  %v4024_v12 = vld.sshfl [vmem:[%s4926_s24 + $0x6] sm:$0x13 pattern:$0x75316420]  ;;  %s4737_s3 = smov 91   ;;  %s4738_s18 = smov 90  }
  0x68   : > { %v558_v27 = vrot.slane %v3983_v14, %v4939_v26  ;;  %v581_v28 = vrot.slane %v3984_v15, %v4939_v26  ;;  %v604_v29 = vrot.slane %v3985_v18, %v4939_v26  ;;  %v627_v30 = vrot.slane %v3986_v20, %v4939_v26  ;;  %v4022_v14 = vld.sshfl [vmem:[%s4926_s24] sm:$0x13 pattern:$0x75316420]  ;;  %s5634_s19 = sld [smem:[#allocation9_spill]] }
  0x69   : > { %v565_v31 = vrot.slane %v551_v22, %v4939_v26  ;;  %v588_v32 = vrot.slane %v574_v23, %v4939_v26  ;;  %v611_v33 = vrot.slane %v597_v24, %v4939_v26  ;;  %v634_v34 = vrot.slane %v620_v25, %v4939_v26  ;;  %v4025_v16 = vld.sshfl [vmem:[%s4926_s24 + $0x9] sm:$0x13 pattern:$0x75316420]  ;;  %s5632_s24 = sld [smem:[#allocation8_spill]] }
  0x6a   : > { %v636_v35 = vunpack.c.l.b16 %v558_v27  ;;  %v639_v36 = vunpack.c.l.b16 %v581_v28  ;;  %v642_v37 = vunpack.c.l.b16 %v604_v29  ;;  %v645_v38 = vunpack.c.l.b16 %v627_v30 }
  0x6b   : > { %v566_v39 = vcombine.high %v558_v27, %v558_v27  ;;  %v589_v40 = vcombine.high %v581_v28, %v581_v28  ;;  %v612_v41 = vcombine.high %v604_v29, %v604_v29  ;;  %v635_v42 = vcombine.high %v627_v30, %v627_v30 }
  0x6c   : > { %v648_v43 = vrot.slane %v639_v36, 7  ;;  %v651_v44 = vrot.slane %v642_v37, 6  ;;  %v654_v45 = vrot.slane %v645_v38, 5  ;;  %v637_v46 = vunpack.c.l.b16 %v565_v31 }
  0x6d   : > { %v638_v47 = vunpack.c.l.b16 %v566_v39  ;;  %v641_v48 = vunpack.c.l.b16 %v589_v40  ;;  %v644_v49 = vunpack.c.l.b16 %v612_v41  ;;  %v647_v50 = vunpack.c.l.b16 %v635_v42 }
  0x6e   : > { %v650_v51 = vsel %vm649_vm1, %v648_v43, %v636_v35  ;;  %v640_v52 = vunpack.c.l.b16 %v588_v32  ;;  %v643_v53 = vunpack.c.l.b16 %v611_v33  ;;  %v646_v54 = vunpack.c.l.b16 %v634_v34 }
  0x6f   : > { %v653_v55 = vsel %vm652_vm2, %v651_v44, %v650_v51  ;;  %v663_v56 = vrot.slane %v641_v48, 7  ;;  %v665_v57 = vrot.slane %v644_v49, 6  ;;  %v667_v58 = vrot.slane %v647_v50, 5 }
  0x70   : > { %v656_v59 = vsel %vm655_vm3, %v654_v45, %v653_v55  ;;  %v657_v60 = vrot.slane %v640_v52, 7  ;;  %v659_v61 = vrot.slane %v643_v53, 6  ;;  %v661_v62 = vrot.slane %v646_v54, 5 }
  0x71   : > { %v4952_v63 = vpack.c.b16 %v656_v59, %v656_v59  ;;  %v664_v0 = vsel %vm649_vm1, %v663_v56, %v638_v47  ;;  %v1661_v13 = vrot.slane %v4023_v10, %v4939_v26  ;;  %v1677_v15 = vcombine.high %v4024_v12, %v4024_v12 }
  0x72   : > { %v666_v1 = vsel %vm652_vm2, %v665_v57, %v664_v0  ;;  %v658_v2 = vsel %vm649_vm1, %v657_v60, %v637_v46  ;;  %v1684_v17 = vrot.slane %v4024_v12, %v4939_v26  ;;  %v1631_v18 = vcombine.high %v4022_v14, %v4022_v14 }
  0x73   : > { %672 = vrot.lane.b32.xlu0 %v4952_v63, %s4728_s0  ;;  %v668_v3 = vsel %vm655_vm3, %v667_v58, %v666_v1  ;;  %v660_v4 = vsel %vm652_vm2, %v659_v61, %v658_v2  ;;  %v1668_v20 = vrot.slane %v1654_v11, %v4939_v26  ;;  %v1638_v21 = vrot.slane %v4022_v14, %v4939_v26  ;;  %v4063_v2 = vld.sshfl [vmem:[%s4928_s16 + $0x3] sm:$0x13 pattern:$0x75316420] }
  0x74   : > { %v4961_v5 = vpack.c.b16 %v668_v3, %v668_v3  ;;  %v662_v6 = vsel %vm655_vm3, %v661_v62, %v660_v4  ;;  %v1719_v22 = vunpack.c.l.b16 %v1661_v13  ;;  %v1669_v23 = vcombine.high %v1661_v13, %v1661_v13  ;;  %v4064_v3 = vld.sshfl [vmem:[%s4928_s16 + $0x6] sm:$0x13 pattern:$0x75316420] }
  0x75   : > { %v4964_v7 = vpack.c.b16 %v662_v6, %v662_v6  ;;  %v1700_v24 = vcombine.high %v4025_v16, %v4025_v16  ;;  %v1707_v25 = vrot.slane %v4025_v16, %v4939_v26  ;;  %v1691_v27 = vrot.slane %v1677_v15, %v4939_v26  ;;  %v4062_v6 = vld.sshfl [vmem:[%s4928_s16] sm:$0x13 pattern:$0x75316420] }
  0x76   : > { %676 = vrot.lane.b32.xlu1 %v4961_v5, %s4728_s0  ;;  %v1722_v28 = vunpack.c.l.b16 %v1684_v17  ;;  %v1645_v29 = vrot.slane %v1631_v18, %v4939_v26  ;;  %v1720_v30 = vunpack.c.l.b16 %v1668_v20  ;;  %v1692_v31 = vcombine.high %v1684_v17, %v1684_v17  ;;  %v4065_v11 = vld.sshfl [vmem:[%s4928_s16 + $0x9] sm:$0x13 pattern:$0x75316420]  ;;  %s5633_s16 = smov %s5632_s24 }
  0x77   : > { %674 = vrot.lane.b32.xlu0 %v4964_v7, %s4728_s0  ;;  %v1716_v32 = vunpack.c.l.b16 %v1638_v21  ;;  %v1728_v33 = vrot.slane %v1719_v22, 7  ;;  %v1646_v34 = vcombine.high %v1638_v21, %v1638_v21  ;;  %v1721_v35 = vunpack.c.l.b16 %v1669_v23 }
  0x78   : > { %v1714_v36 = vrot.slane %v1700_v24, %v4939_v26  ;;  %v1725_v37 = vunpack.c.l.b16 %v1707_v25  ;;  %v1723_v38 = vunpack.c.l.b16 %v1691_v27  ;;  %v1715_v39 = vcombine.high %v1707_v25, %v1707_v25 }
  0x79   : > { %v1730_v40 = vrot.slane %v1722_v28, 6  ;;  %v1717_v41 = vunpack.c.l.b16 %v1645_v29  ;;  %v1734_v42 = vrot.slane %v1720_v30, 7  ;;  %v1724_v43 = vunpack.c.l.b16 %v1692_v31 }
  0x7a   : > { %871 = vrot.lane.b32.xlu1 %v4952_v63, %s4729_s5  ;;  %v1729_v44 = vsel %vm649_vm1, %v1728_v33, %v1716_v32  ;;  %v1718_v45 = vunpack.c.l.b16 %v1646_v34  ;;  %v1740_v46 = vrot.slane %v1721_v35, 7  ;;  %v1726_v47 = vunpack.c.l.b16 %v1714_v36 }
  0x7b   : > { %873 = vrot.lane.b32.xlu0 %v4964_v7, %s4729_s5  ;;  %v1732_v48 = vrot.slane %v1725_v37, 5  ;;  %v1736_v49 = vrot.slane %v1723_v38, 6  ;;  %v1727_v50 = vunpack.c.l.b16 %v1715_v39  ;;  %v1731_v51 = vsel %vm652_vm2, %v1730_v40, %v1729_v44 }
  0x7c   : > { %v1735_v52 = vsel %vm649_vm1, %v1734_v42, %v1717_v41  ;;  %v1742_v53 = vrot.slane %v1724_v43, 6  ;;  %v1741_v54 = vsel %vm649_vm1, %v1740_v46, %v1718_v45  ;;  %v1738_v55 = vrot.slane %v1726_v47, 5 }
  0x7d   : > { %v1733_v56 = vsel %vm655_vm3, %v1732_v48, %v1731_v51  ;;  %v1737_v57 = vsel %vm652_vm2, %v1736_v49, %v1735_v52  ;;  %v1744_v58 = vrot.slane %v1727_v50, 5  ;;  %v2736_v4 = vrot.slane %v4063_v2, %v4939_v26 }
  0x7e   : > { %875 = vrot.lane.b32.xlu1 %v4961_v5, %s4729_s5  ;;  %v1743_v59 = vsel %vm652_vm2, %v1742_v53, %v1741_v54  ;;  %v5033_v60 = vpack.c.b16 %v1733_v56, %v1733_v56  ;;  %v1739_v61 = vsel %vm655_vm3, %v1738_v55, %v1737_v57  ;;  %v2759_v10 = vrot.slane %v4064_v3, %v4939_v26 }
  0x7f   : > { %978 = vrot.lane.b32.xlu0 %v4952_v63, %s4731_s12  ;;  %v1745_v62 = vsel %vm655_vm3, %v1744_v58, %v1743_v59  ;;  %v5039_v0 = vpack.c.b16 %v1739_v61, %v1739_v61  ;;  %v2713_v12 = vrot.slane %v4062_v6, %v4939_v26  ;;  %v2794_v13 = vunpack.c.l.b16 %v2736_v4 }
  0x80   : > { %v5043_v1 = vpack.c.b16 %v1745_v62, %v1745_v62  ;;  %v2729_v14 = vcombine.high %v4063_v2, %v4063_v2  ;;  %v2782_v15 = vrot.slane %v4065_v11, %v4939_v26  ;;  %v2797_v16 = vunpack.c.l.b16 %v2759_v10 }
  0x81   : > { %v2752_v17 = vcombine.high %v4064_v3, %v4064_v3  ;;  %v2791_v18 = vunpack.c.l.b16 %v2713_v12  ;;  %v2803_v20 = vrot.slane %v2794_v13, 7  ;;  %v2706_v21 = vcombine.high %v4062_v6, %v4062_v6 }
  0x82   : > { %980 = vrot.lane.b32.xlu1 %v4964_v7, %s4731_s12  ;;  %v2743_v22 = vrot.slane %v2729_v14, %v4939_v26  ;;  %v2800_v23 = vunpack.c.l.b16 %v2782_v15  ;;  %v2805_v24 = vrot.slane %v2797_v16, 6  ;;  %v2775_v27 = vcombine.high %v4065_v11, %v4065_v11 }
  0x83   : > { %982 = vrot.lane.b32.xlu0 %v4961_v5, %s4731_s12  ;;  %v2766_v25 = vrot.slane %v2752_v17, %v4939_v26  ;;  %v2804_v28 = vsel %vm649_vm1, %v2803_v20, %v2791_v18  ;;  %v2720_v29 = vrot.slane %v2706_v21, %v4939_v26  ;;  %v2721_v37 = vcombine.high %v2713_v12, %v2713_v12  ;;  %v537_v17 = vld [vmem:[%s5633_s16] sm:$0x3] }
  0x84   : > { %v2795_v30 = vunpack.c.l.b16 %v2743_v22  ;;  %v2806_v31 = vsel %vm652_vm2, %v2805_v24, %v2804_v28  ;;  %v2807_v32 = vrot.slane %v2800_v23, 5  ;;  %v2789_v33 = vrot.slane %v2775_v27, %v4939_v26  ;;  %v3993_v27 = vld [vmem:[%s5633_s16 + $0x4] sm:$0x3] }
  0x85   : > { %v2798_v34 = vunpack.c.l.b16 %v2766_v25  ;;  %v2792_v35 = vunpack.c.l.b16 %v2720_v29  ;;  %v2744_v38 = vcombine.high %v2736_v4, %v2736_v4  ;;  %v2767_v42 = vcombine.high %v2759_v10, %v2759_v10  ;;  %v3982_v10 = vld [vmem:[%s5632_s24 + $0x2] sm:$0x3] }
  0x86   : > { %1085 = vrot.lane.b32.xlu1 %v4952_v63, %s4734_s20  ;;  %v2809_v36 = vrot.slane %v2795_v30, 7  ;;  %v2808_v39 = vsel %vm655_vm3, %v2807_v32, %v2806_v31  ;;  %v2801_v40 = vunpack.c.l.b16 %v2789_v33  ;;  %v2790_v45 = vcombine.high %v2782_v15, %v2782_v15 }
  0x87   : > { %1087 = vrot.lane.b32.xlu0 %v4964_v7, %s4734_s20  ;;  %v2811_v41 = vrot.slane %v2798_v34, 6  ;;  %v5106_v43 = vpack.c.b16 %v2808_v39, %v2808_v39  ;;  %v2793_v46 = vunpack.c.l.b16 %v2721_v37  ;;  %v2796_v48 = vunpack.c.l.b16 %v2744_v38 }
  0x88   : > { %v2810_v44 = vsel %vm649_vm1, %v2809_v36, %v2792_v35  ;;  %v2813_v47 = vrot.slane %v2801_v40, 5  ;;  %v2799_v49 = vunpack.c.l.b16 %v2767_v42  ;;  %v2802_v50 = vunpack.c.l.b16 %v2790_v45  ;;  %v3997_v35 = vld [vmem:[%s5633_s16 + $0x6] sm:$0x3] }
  0x89   : > { %v2812_v26 = vsel %vm652_vm2, %v2811_v41, %v2810_v44  ;;  %v2815_v52 = vrot.slane %v2796_v48, 7  ;;  %vm685_vm5 = vcmask 1041408   ;;  %vm678_vm6 = vcmask 1039360   ;;  %v4001_v44 = vld [vmem:[%s5633_s16 + $0x8] sm:$0x3] }
  0x8a   : > { %1089 = vrot.lane.b32.xlu1 %v4961_v5, %s4734_s20  ;;  %v2814_v51 = vsel %vm655_vm3, %v2813_v47, %v2812_v26  ;;  %v2817_v53 = vrot.slane %v2799_v49, 6  ;;  %v2819_v55 = vrot.slane %v2802_v50, 5  ;;  %vm681_vm7 = vcmask 31744  }
  0x8b   : > { %1192 = vrot.lane.b32.xlu0 %v4952_v63, %s4735_s17  ;;  %v5113_v54 = vpack.c.b16 %v2814_v51, %v2814_v51  ;;  %v2816_v56 = vsel %vm649_vm1, %v2815_v52, %v2793_v46  ;;  %v786_v12 = vsel %vm685_vm5, %v4961_v5, 0  ;;  %v780_v14 = vsel %vm685_vm5, %v4952_v63, 0  ;;  %v4005_v51 = vld [vmem:[%s5633_s16 + $0xa] sm:$0x3] }
  0x8c   : > { %v2818_v57 = vsel %vm652_vm2, %v2817_v53, %v2816_v56  ;;  %vm877_vm8 = vcmask 1031168   ;;  %vm984_vm9 = vcmask 900096   ;;  %vm1091_vm10 = vcmask 891904  }
  0x8d   : > { %v2820_v58 = vsel %vm655_vm3, %v2819_v55, %v2818_v57  ;;  %vm1198_vm11 = vcmask 883712   ;;  %vm1305_vm12 = vcmask 752640   ;;  %vm1412_vm13 = vcmask 744448  }
  0x8e   : > { %1194 = vrot.lane.b32.xlu1 %v4964_v7, %s4735_s17  ;;  %v5120_v59 = vpack.c.b16 %v2820_v58, %v2820_v58  ;;  %vm1519_vm14 = vcmask 736256   ;;  %vm3773_vm15 = vcmask 551936   ;;  %vm3796_vm0 = vcmask 1043456  }
  0x8f   : > { %1196 = vrot.lane.b32.xlu0 %v4961_v5, %s4735_s17  ;;  %vm3805_vm1 = vcmask 3072  }
  0x92   : > { %1299 = vrot.lane.b32.xlu1 %v4952_v63, %s4736_s23 }
  0x93   : > { %1301 = vrot.lane.b32.xlu0 %v4964_v7, %s4736_s23 }
  0x96   : > { %1303 = vrot.lane.b32.xlu1 %v4961_v5, %s4736_s23 }
  0x97   : > { %1406 = vrot.lane.b32.xlu0 %v4952_v63, %s4737_s3 }
  0x9a   : > { %1408 = vrot.lane.b32.xlu1 %v4964_v7, %s4737_s3 }
  0x9b   : > { %1410 = vrot.lane.b32.xlu0 %v4961_v5, %s4737_s3 }
  0x9e   : > { %1513 = vrot.lane.b32.xlu1 %v4952_v63, %s4738_s18 }
  0x9f   : > { %1515 = vrot.lane.b32.xlu0 %v4964_v7, %s4738_s18 }
  0xa2   : > { %1517 = vrot.lane.b32.xlu1 %v4961_v5, %s4738_s18 }
  0xa3   : > { %1847 = vrot.lane.b32.xlu0 %v5033_v60, %s4728_s0 }
  0xa6   : > { %1849 = vrot.lane.b32.xlu1 %v5039_v0, %s4728_s0 }
  0xa7   : > { %1851 = vrot.lane.b32.xlu0 %v5043_v1, %s4728_s0 }
  0xaa   : > { %1953 = vrot.lane.b32.xlu1 %v5033_v60, %s4729_s5 }
  0xab   : > { %1955 = vrot.lane.b32.xlu0 %v5039_v0, %s4729_s5 }
  0xae   : > { %1957 = vrot.lane.b32.xlu1 %v5043_v1, %s4729_s5 }
  0xaf   : > { %2059 = vrot.lane.b32.xlu0 %v5033_v60, %s4731_s12 }
  0xb2   : > { %2061 = vrot.lane.b32.xlu1 %v5039_v0, %s4731_s12 }
  0xb3   : > { %2063 = vrot.lane.b32.xlu0 %v5043_v1, %s4731_s12 }
  0xb6   : > { %2165 = vrot.lane.b32.xlu1 %v5033_v60, %s4734_s20 }
  0xb7   : > { %2167 = vrot.lane.b32.xlu0 %v5039_v0, %s4734_s20 }
  0xba   : > { %2169 = vrot.lane.b32.xlu1 %v5043_v1, %s4734_s20 }
  0xbb   : > { %2271 = vrot.lane.b32.xlu0 %v5033_v60, %s4735_s17 }
  0xbe   : > { %2273 = vrot.lane.b32.xlu1 %v5039_v0, %s4735_s17 }
  0xbf   : > { %2275 = vrot.lane.b32.xlu0 %v5043_v1, %s4735_s17 }
  0xc2   : > { %2377 = vrot.lane.b32.xlu1 %v5033_v60, %s4736_s23 }
  0xc3   : > { %2379 = vrot.lane.b32.xlu0 %v5039_v0, %s4736_s23 }
  0xc6   : > { %2381 = vrot.lane.b32.xlu1 %v5043_v1, %s4736_s23 }
  0xc7   : > { %2483 = vrot.lane.b32.xlu0 %v5033_v60, %s4737_s3 }
  0xca   : > { %2485 = vrot.lane.b32.xlu1 %v5039_v0, %s4737_s3 }
  0xcb   : > { %2487 = vrot.lane.b32.xlu0 %v5043_v1, %s4737_s3 }
  0xce   : > { %2589 = vrot.lane.b32.xlu1 %v5033_v60, %s4738_s18 }
  0xcf   : > { %2591 = vrot.lane.b32.xlu0 %v5039_v0, %s4738_s18 }
  0xd2   : > { %2593 = vrot.lane.b32.xlu1 %v5043_v1, %s4738_s18 }
  0xd3   : > { %2922 = vrot.lane.b32.xlu0 %v5106_v43, %s4728_s0 }
  0xd6   : > { %2924 = vrot.lane.b32.xlu1 %v5113_v54, %s4728_s0 }
  0xd7   : > { %2926 = vrot.lane.b32.xlu0 %v5120_v59, %s4728_s0 }
  0xda   : > { %3028 = vrot.lane.b32.xlu1 %v5106_v43, %s4729_s5 }
  0xdb   : > { %3030 = vrot.lane.b32.xlu0 %v5113_v54, %s4729_s5 }
  0xde   : > { %3032 = vrot.lane.b32.xlu1 %v5120_v59, %s4729_s5 }
  0xdf   : > { %3134 = vrot.lane.b32.xlu0 %v5106_v43, %s4731_s12 }
  0xe2   : > { %3136 = vrot.lane.b32.xlu1 %v5113_v54, %s4731_s12 }
  0xe3   : > { %3138 = vrot.lane.b32.xlu0 %v5120_v59, %s4731_s12  ;;  %s5636_s12 = sld [smem:[#allocation12_spill]] }
  0xe5   : > { %v673_v61 = vpop.permute.xlu0 %672 }
  0xe6   : > { %3240 = vrot.lane.b32.xlu1 %v5106_v43, %s4734_s20 }
  0xe7   : > { %3242 = vrot.lane.b32.xlu0 %v5113_v54, %s4734_s20 }
  0xe8   : > { %v677_v62 = vpop.permute.xlu1 %676 }
  0xe9   : > { %v693_v2 = vsel %vm685_vm5, %v677_v62, 0  ;;  %v675_v3 = vpop.permute.xlu0 %674 }
  0xea   : > { %4158 = vmatpush3.bf16.msra.mxu1 %v693_v2  ;;  %v680_v4 = vsel %vm678_vm6, %v675_v3, %v677_v62  ;;  %v679_v6 = vsel %vm678_vm6, %v673_v61, %v675_v3  ;;  %3244 = vrot.lane.b32.xlu1 %v5120_v59, %s4734_s20  ;;  %v4009_v62 = vld [vmem:[%s5633_s16 + $0xc] sm:$0x3] }
  0xeb   : > { %3987 = vmatprep.subr.msk.bf16.mxu0 %vm685_vm5, %v680_v4  ;;  %v687_v11 = vsel %vm685_vm5, %v679_v6, 0  ;;  %4163 = vmatprep.subr.bf16.mxu1 %v4730_v8 }
  0xec   : > { %696 = vmatpush1.bf16.msra.mxu0 %v687_v11  ;;  %v872_v13 = vpop.permute.xlu1 %871  ;;  %3346 = vrot.lane.b32.xlu0 %v5106_v43, %s4735_s17 }
  0xed   : > { %4160 = vmatmul.mubr.msk.bf16.vlgmr.msra.gmra.mrb[0].mxu1 %vm681_vm7, %v3982_v10  ;;  %3990 = vmatprep.subr.msk.bf16.mxu0 %vm685_vm5, %v4964_v7  ;;  %v874_v15 = vpop.permute.xlu0 %873 }
  0xee   : > { %4164 = vmatpush3.bf16.msra.mxu1 %v786_v12  ;;  %4165 = vmatprep.mubr.msk.bf16.mxu1 %vm4732_vm4, %v4730_v8  ;;  %v878_v63 = vsel %vm877_vm8, %v872_v13, %v874_v15  ;;  %v4013_v12 = vld [vmem:[%s5633_s16 + $0xe] sm:$0x3] }
  0xef   : > { %3988 = vmatmul.mubr.msk.bf16.vlgmr.msra.gmra.mrb[0].mxu0 %vm681_vm7, %v3982_v10  ;;  %4169 = vmatprep.subr.bf16.mxu1 %v4730_v8  ;;  %v884_v22 = vsel %vm685_vm5, %v878_v63, 0 }
  0xf0   : > { %789 = vmatpush1.bf16.msra.mxu0 %v780_v14  ;;  %v876_v5 = vpop.permute.xlu1 %875  ;;  %820 = vmatprep.mubr.bf16.mxu0 %v4733_v9 }
  0xf1   : > { %v879_v16 = vsel %vm877_vm8, %v874_v15, %v876_v5  ;;  %v979_v7 = vpop.permute.xlu0 %978  ;;  %3348 = vrot.lane.b32.xlu1 %v5113_v54, %s4735_s17  ;;  %v890_v18 = vsel %vm685_vm5, %v876_v5, 0  ;;  %3350 = vrot.lane.b32.xlu0 %v5120_v59, %s4735_s17  ;;  %v4017_v5 = vld [vmem:[%s5633_s16 + $0x10] sm:$0x3] }
  0xf2   : > { %3994 = vmatprep.subr.msk.bf16.mxu0 %vm685_vm5, %v879_v16  ;;  %v1759_v16 = vsel %vm685_vm5, %v5043_v1, 0 }
  0xf4   : > { %v981_v20 = vpop.permute.xlu1 %980 }
  0xf5   : > { %v983_v21 = vpop.permute.xlu0 %982  ;;  %3452 = vrot.lane.b32.xlu1 %v5106_v43, %s4736_s23  ;;  %3454 = vrot.lane.b32.xlu0 %v5113_v54, %s4736_s23  ;;  %v985_v25 = vsel %vm984_vm9, %v979_v7, %v981_v20 }
  0xf6   : > { %v986_v23 = vsel %vm984_vm9, %v981_v20, %v983_v21  ;;  %v997_v28 = vsel %vm685_vm5, %v983_v21, 0  ;;  %v991_v31 = vsel %vm685_vm5, %v985_v25, 0 }
  0xf8   : > { %v1086_v24 = vpop.permute.xlu1 %1085 }
  0xf9   : > { %4166 = vmatmul.mubr.msk.bf16.vlgmr.msra.gmra.mrb[0].mxu1 %vm681_vm7, %v537_v17  ;;  %3456 = vrot.lane.b32.xlu1 %v5120_v59, %s4736_s23  ;;  %v1088_v29 = vpop.permute.xlu0 %1087 }
  0xfa   : > { %4170 = vmatpush3.bf16.msra.mxu1 %v890_v18  ;;  %4171 = vmatprep.mubr.msk.bf16.mxu1 %vm4732_vm4, %v4730_v8  ;;  %v1092_v34 = vsel %vm1091_vm10, %v1086_v24, %v1088_v29 }
  0xfb   : > { %3991 = vmatmul.mubr.msk.bf16.vlgmr.msra.gmra.mrb[0].mxu0 %vm681_vm7, %v537_v17  ;;  %4175 = vmatprep.subr.bf16.mxu1 %v4730_v8  ;;  %v1098_v39 = vsel %vm685_vm5, %v1092_v34, 0  ;;  %v1753_v17 = vsel %vm685_vm5, %v5033_v60, 0  ;;  %v4021_v60 = vld [vmem:[%s5633_s16 + $0x12] sm:$0x3] }
  0xfc   : > { %893 = vmatpush1.bf16.msra.mxu0 %v884_v22  ;;  %924 = vmatprep.mubr.bf16.mxu0 %v4733_v9  ;;  %v1090_v30 = vpop.permute.xlu1 %1089 }
  0xfd   : > { %3998 = vmatprep.subr.msk.bf16.mxu0 %vm685_vm5, %v986_v23  ;;  %3558 = vrot.lane.b32.xlu0 %v5106_v43, %s4737_s3  ;;  %v1093_v32 = vsel %vm1091_vm10, %v1088_v29, %v1090_v30  ;;  %v1193_v33 = vpop.permute.xlu0 %1192  ;;  %v1104_v36 = vsel %vm685_vm5, %v1090_v30, 0 }
  0xfe   : > { %3560 = vrot.lane.b32.xlu1 %v5113_v54, %s4737_s3 }
 0x100   : > { %v1195_v37 = vpop.permute.xlu1 %1194 }
 0x101   : > { %3562 = vrot.lane.b32.xlu0 %v5120_v59, %s4737_s3  ;;  %v1197_v38 = vpop.permute.xlu0 %1196  ;;  %v1199_v42 = vsel %vm1198_vm11, %v1193_v33, %v1195_v37 }
 0x102   : > { %3664 = vrot.lane.b32.xlu1 %v5106_v43, %s4738_s18  ;;  %v1200_v40 = vsel %vm1198_vm11, %v1195_v37, %v1197_v38  ;;  %v1211_v45 = vsel %vm685_vm5, %v1197_v38, 0  ;;  %v1205_v47 = vsel %vm685_vm5, %v1199_v42, 0 }
 0x104   : > { %v1300_v41 = vpop.permute.xlu1 %1299 }
 0x105   : > { %4172 = vmatmul.mubr.msk.bf16.vlgmr.msra.gmra.mrb[0].mxu1 %vm681_vm7, %v3993_v27  ;;  %3666 = vrot.lane.b32.xlu0 %v5113_v54, %s4738_s18  ;;  %v1302_v46 = vpop.permute.xlu0 %1301 }
 0x106   : > { %4176 = vmatpush3.bf16.msra.mxu1 %v997_v28  ;;  %4177 = vmatprep.mubr.msk.bf16.mxu1 %vm4732_vm4, %v4730_v8  ;;  %v1306_v50 = vsel %vm1305_vm12, %v1300_v41, %v1302_v46  ;;  %v4029_v28 = vld [vmem:[%s5633_s16 + $0x14] sm:$0x3] }
 0x107   : > { %3995 = vmatmul.mubr.msk.bf16.vlgmr.msra.gmra.mrb[0].mxu0 %vm681_vm7, %v3993_v27  ;;  %4181 = vmatprep.subr.bf16.mxu1 %v4730_v8  ;;  %v1312_v56 = vsel %vm685_vm5, %v1306_v50, 0 }
 0x108   : > { %1000 = vmatpush1.bf16.msra.mxu0 %v991_v31  ;;  %1031 = vmatprep.mubr.bf16.mxu0 %v4733_v9  ;;  %v1304_v26 = vpop.permute.xlu1 %1303 }
 0x109   : > { %4002 = vmatprep.subr.msk.bf16.mxu0 %vm685_vm5, %v1093_v32  ;;  %3668 = vrot.lane.b32.xlu1 %v5120_v59, %s4738_s18  ;;  %v1307_v48 = vsel %vm1305_vm12, %v1302_v46, %v1304_v26  ;;  %v1407_v49 = vpop.permute.xlu0 %1406  ;;  %v1318_v52 = vsel %vm685_vm5, %v1304_v26, 0 }
 0x10c   : > { %v1409_v53 = vpop.permute.xlu1 %1408 }
 0x10d   : > { %v1411_v55 = vpop.permute.xlu0 %1410  ;;  %v1413_v61 = vsel %vm1412_vm13, %v1407_v49, %v1409_v53 }
 0x10e   : > { %v1414_v57 = vsel %vm1412_vm13, %v1409_v53, %v1411_v55  ;;  %v1425_v2 = vsel %vm685_vm5, %v1411_v55, 0  ;;  %v1419_v6 = vsel %vm685_vm5, %v1413_v61, 0 }
 0x110   : > { %v1514_v58 = vpop.permute.xlu1 %1513 }
 0x111   : > { %4178 = vmatmul.mubr.msk.bf16.vlgmr.msra.gmra.mrb[0].mxu1 %vm681_vm7, %v3997_v35  ;;  %v1516_v3 = vpop.permute.xlu0 %1515 }
 0x112   : > { %4182 = vmatpush3.bf16.msra.mxu1 %v1104_v36  ;;  %4183 = vmatprep.mubr.msk.bf16.mxu1 %vm4732_vm4, %v4730_v8  ;;  %v1520_v11 = vsel %vm1519_vm14, %v1514_v58, %v1516_v3  ;;  %v4033_v36 = vld [vmem:[%s5633_s16 + $0x16] sm:$0x3] }
 0x113   : > { %3999 = vmatmul.mubr.msk.bf16.vlgmr.msra.gmra.mrb[0].mxu0 %vm681_vm7, %v3997_v35  ;;  %4187 = vmatprep.subr.bf16.mxu1 %v4730_v8  ;;  %v1526_v14 = vsel %vm685_vm5, %v1520_v11, 0 }
 0x114   : > { %1107 = vmatpush1.bf16.msra.mxu0 %v1098_v39  ;;  %1138 = vmatprep.mubr.bf16.mxu0 %v4733_v9  ;;  %v1518_v4 = vpop.permute.xlu1 %1517 }
 0x115   : > { %4006 = vmatprep.subr.msk.bf16.mxu0 %vm685_vm5, %v1200_v40  ;;  %v1521_v10 = vsel %vm1519_vm14, %v1516_v3, %v1518_v4  ;;  %v1532_v13 = vsel %vm685_vm5, %v1518_v4, 0  ;;  %v1848_v15 = vpop.permute.xlu0 %1847 }
 0x118   : > { %v1850_v7 = vpop.permute.xlu1 %1849 }
 0x119   : > { %v1852_v63 = vpop.permute.xlu0 %1851  ;;  %v1853_v18 = vsel %vm678_vm6, %v1848_v15, %v1850_v7 }
 0x11a   : > { %v1865_v20 = vsel %vm685_vm5, %v1852_v63, 0  ;;  %v1859_v23 = vsel %vm685_vm5, %v1853_v18, 0 }
 0x11c   : > { %v1954_v1 = vpop.permute.xlu1 %1953 }
 0x11d   : > { %4184 = vmatmul.mubr.msk.bf16.vlgmr.msra.gmra.mrb[0].mxu1 %vm681_vm7, %v4001_v44  ;;  %v1956_v21 = vpop.permute.xlu0 %1955 }
 0x11e   : > { %4188 = vmatpush3.bf16.msra.mxu1 %v1211_v45  ;;  %4189 = vmatprep.mubr.msk.bf16.mxu1 %vm4732_vm4, %v4730_v8  ;;  %v1959_v27 = vsel %vm877_vm8, %v1954_v1, %v1956_v21  ;;  %v4037_v45 = vld [vmem:[%s5633_s16 + $0x18] sm:$0x3] }
 0x11f   : > { %4003 = vmatmul.mubr.msk.bf16.vlgmr.msra.gmra.mrb[0].mxu0 %vm681_vm7, %v4001_v44  ;;  %4193 = vmatprep.subr.bf16.mxu1 %v4730_v8  ;;  %v1965_v32 = vsel %vm685_vm5, %v1959_v27, 0 }
 0x120   : > { %1214 = vmatpush1.bf16.msra.mxu0 %v1205_v47  ;;  %1245 = vmatprep.mubr.bf16.mxu0 %v4733_v9  ;;  %v1958_v22 = vpop.permute.xlu1 %1957 }
 0x121   : > { %4010 = vmatprep.subr.msk.bf16.mxu0 %vm685_vm5, %v1307_v48  ;;  %v1960_v24 = vsel %vm877_vm8, %v1956_v21, %v1958_v22  ;;  %v2060_v25 = vpop.permute.xlu0 %2059  ;;  %v1971_v29 = vsel %vm685_vm5, %v1958_v22, 0  ;;  %v2834_v21 = vsel %vm685_vm5, %v5120_v59, 0 }
 0x124   : > { %v2062_v30 = vpop.permute.xlu1 %2061 }
 0x125   : > { %v2064_v31 = vpop.permute.xlu0 %2063  ;;  %v2065_v35 = vsel %vm984_vm9, %v2060_v25, %v2062_v30 }
 0x126   : > { %v2066_v33 = vsel %vm984_vm9, %v2062_v30, %v2064_v31  ;;  %v2077_v37 = vsel %vm685_vm5, %v2064_v31, 0  ;;  %v2071_v40 = vsel %vm685_vm5, %v2065_v35, 0 }
 0x128   : > { %v2166_v34 = vpop.permute.xlu1 %2165 }
 0x129   : > { %4190 = vmatmul.mubr.msk.bf16.vlgmr.msra.gmra.mrb[0].mxu1 %vm681_vm7, %v4005_v51  ;;  %v2168_v38 = vpop.permute.xlu0 %2167 }
 0x12a   : > { %4194 = vmatpush3.bf16.msra.mxu1 %v1318_v52  ;;  %4195 = vmatprep.mubr.msk.bf16.mxu1 %vm4732_vm4, %v4730_v8  ;;  %v2171_v44 = vsel %vm1091_vm10, %v2166_v34, %v2168_v38  ;;  %v4041_v52 = vld [vmem:[%s5633_s16 + $0x1a] sm:$0x3]  ;;  %v4069_v34 = vld [vmem:[%s5633_s16 + $0x26] sm:$0x3] }
 0x12b   : > { %4007 = vmatmul.mubr.msk.bf16.vlgmr.msra.gmra.mrb[0].mxu0 %vm681_vm7, %v4005_v51  ;;  %4199 = vmatprep.subr.bf16.mxu1 %v4730_v8  ;;  %v2177_v48 = vsel %vm685_vm5, %v2171_v44, 0 }
 0x12c   : > { %1321 = vmatpush1.bf16.msra.mxu0 %v1312_v56  ;;  %1352 = vmatprep.mubr.bf16.mxu0 %v4733_v9  ;;  %v2170_v39 = vpop.permute.xlu1 %2169 }
 0x12d   : > { %4014 = vmatprep.subr.msk.bf16.mxu0 %vm685_vm5, %v1414_v57  ;;  %v2172_v41 = vsel %vm1091_vm10, %v2168_v38, %v2170_v39  ;;  %v2272_v42 = vpop.permute.xlu0 %2271  ;;  %v2183_v46 = vsel %vm685_vm5, %v2170_v39, 0 }
 0x130   : > { %v2274_v26 = vpop.permute.xlu1 %2273 }
 0x131   : > { %v2276_v47 = vpop.permute.xlu0 %2275  ;;  %v2277_v51 = vsel %vm1198_vm11, %v2272_v42, %v2274_v26  ;;  %v4073_v42 = vld [vmem:[%s5633_s16 + $0x28] sm:$0x3] }
 0x132   : > { %v2278_v49 = vsel %vm1198_vm11, %v2274_v26, %v2276_v47  ;;  %v2289_v53 = vsel %vm685_vm5, %v2276_v47, 0  ;;  %v2283_v57 = vsel %vm685_vm5, %v2277_v51, 0 }
 0x134   : > { %v2378_v50 = vpop.permute.xlu1 %2377 }
 0x135   : > { %4196 = vmatmul.mubr.msk.bf16.vlgmr.msra.gmra.mrb[0].mxu1 %vm681_vm7, %v4009_v62  ;;  %v2380_v55 = vpop.permute.xlu0 %2379 }
 0x136   : > { %4200 = vmatpush3.bf16.msra.mxu1 %v1425_v2  ;;  %4201 = vmatprep.mubr.msk.bf16.mxu1 %vm4732_vm4, %v4730_v8  ;;  %v4045_v2 = vld [vmem:[%s5633_s16 + $0x1c] sm:$0x3] }
 0x137   : > { %4011 = vmatmul.mubr.msk.bf16.vlgmr.msra.gmra.mrb[0].mxu0 %vm681_vm7, %v4009_v62  ;;  %4205 = vmatprep.subr.bf16.mxu1 %v4730_v8  ;;  %v2383_v62 = vsel %vm1305_vm12, %v2378_v50, %v2380_v55  ;;  %v4077_v50 = vld [vmem:[%s5633_s16 + $0x2a] sm:$0x3] }
 0x138   : > { %1428 = vmatpush1.bf16.msra.mxu0 %v1419_v6  ;;  %1459 = vmatprep.mubr.bf16.mxu0 %v4733_v9  ;;  %v2382_v56 = vpop.permute.xlu1 %2381 }
 0x139   : > { %4018 = vmatprep.subr.msk.bf16.mxu0 %vm685_vm5, %v1521_v10  ;;  %v2384_v58 = vsel %vm1305_vm12, %v2380_v55, %v2382_v56  ;;  %v2484_v61 = vpop.permute.xlu0 %2483  ;;  %v2395_v3 = vsel %vm685_vm5, %v2382_v56, 0  ;;  %v2389_v10 = vsel %vm685_vm5, %v2383_v62, 0 }
 0x13c   : > { %v2486_v4 = vpop.permute.xlu1 %2485 }
 0x13d   : > { %v2488_v6 = vpop.permute.xlu0 %2487 }
 0x13e   : > { %v2490_v11 = vsel %vm1412_vm13, %v2486_v4, %v2488_v6  ;;  %v2501_v15 = vsel %vm685_vm5, %v2488_v6, 0 }
 0x141   : > { %4202 = vmatmul.mubr.msk.bf16.vlgmr.msra.gmra.mrb[0].mxu1 %vm681_vm7, %v4013_v12 }
 0x142   : > { %4206 = vmatpush3.bf16.msra.mxu1 %v1532_v13  ;;  %4207 = vmatprep.mubr.msk.bf16.mxu1 %vm4732_vm4, %v4730_v8  ;;  %v2489_v13 = vsel %vm1412_vm13, %v2484_v61, %v2486_v4  ;;  %v4081_v61 = vld [vmem:[%s5633_s16 + $0x2c] sm:$0x3] }
 0x143   : > { %4015 = vmatmul.mubr.msk.bf16.vlgmr.msra.gmra.mrb[0].mxu0 %vm681_vm7, %v4013_v12  ;;  %4211 = vmatprep.subr.bf16.mxu1 %v4730_v8  ;;  %v2590_v12 = vpop.permute.xlu1 %2589 }
 0x144   : > { %1535 = vmatpush1.bf16.msra.mxu0 %v1526_v14  ;;  %1566 = vmatprep.mubr.bf16.mxu0 %v4733_v9  ;;  %v4049_v14 = vld [vmem:[%s5633_s16 + $0x1e] sm:$0x3] }
 0x145   : > { %4026 = vmatprep.subr.msk.bf16.mxu0 %vm685_vm5, %v5039_v0  ;;  %v1854_v0 = vsel %vm678_vm6, %v1850_v7, %v1852_v63  ;;  %v2495_v7 = vsel %vm685_vm5, %v2489_v13, 0 }
 0x14d   : > { %4208 = vmatmul.mubr.msk.bf16.vlgmr.msra.gmra.mrb[0].mxu1 %vm681_vm7, %v4017_v5 }
 0x14e   : > { %4212 = vmatpush3.bf16.msra.mxu1 %v1759_v16  ;;  %4213 = vmatprep.mubr.msk.bf16.mxu1 %vm4732_vm4, %v4730_v8  ;;  %v2594_v16 = vpop.permute.xlu1 %2593 }
 0x14f   : > { %4019 = vmatmul.mubr.msk.bf16.vlgmr.msra.gmra.mrb[0].mxu0 %vm681_vm7, %v4017_v5  ;;  %4217 = vmatprep.subr.bf16.mxu1 %v4730_v8  ;;  %v2592_v5 = vpop.permute.xlu0 %2591  ;;  %v2607_v1 = vsel %vm685_vm5, %v2594_v16, 0 }
 0x150   : > { %1762 = vmatpush1.bf16.msra.mxu0 %v1753_v17  ;;  %1793 = vmatprep.mubr.bf16.mxu0 %v4733_v9  ;;  %v2596_v63 = vsel %vm1519_vm14, %v2592_v5, %v2594_v16  ;;  %v2595_v17 = vsel %vm1519_vm14, %v2590_v12, %v2592_v5  ;;  %v4085_v12 = vld [vmem:[%s5633_s16 + $0x2e] sm:$0x3] }
 0x151   : > { %4030 = vmatprep.subr.msk.bf16.mxu0 %vm685_vm5, %v1854_v0  ;;  %v4053_v0 = vld [vmem:[%s5633_s16 + $0x20] sm:$0x3]  ;;  %v2601_v18 = vsel %vm685_vm5, %v2595_v17, 0  ;;  %v4089_v17 = vld [vmem:[%s5633_s16 + $0x30] sm:$0x3] }
 0x152   : > { %v2925_v22 = vpop.permute.xlu1 %2924 }
 0x156   : > { %v3029_v59 = vpop.permute.xlu1 %3028 }
 0x159   : > { %4214 = vmatmul.mubr.msk.bf16.vlgmr.msra.gmra.mrb[0].mxu1 %vm681_vm7, %v4021_v60 }
 0x15a   : > { %4218 = vmatpush3.bf16.msra.mxu1 %v1865_v20  ;;  %4219 = vmatprep.mubr.msk.bf16.mxu1 %vm4732_vm4, %v4730_v8  ;;  %v4057_v20 = vld [vmem:[%s5633_s16 + $0x22] sm:$0x3] }
 0x15b   : > { %4027 = vmatmul.mubr.msk.bf16.vlgmr.msra.gmra.mrb[0].mxu0 %vm681_vm7, %v4021_v60  ;;  %4223 = vmatprep.subr.bf16.mxu1 %v4730_v8  ;;  %v2923_v60 = vpop.permute.xlu0 %2922 }
 0x15c   : > { %1868 = vmatpush1.bf16.msra.mxu0 %v1859_v23  ;;  %1899 = vmatprep.mubr.bf16.mxu0 %v4733_v9  ;;  %v2928_v25 = vsel %vm678_vm6, %v2923_v60, %v2925_v22 }
 0x15d   : > { %4034 = vmatprep.subr.msk.bf16.mxu0 %vm685_vm5, %v1960_v24  ;;  %v2828_v24 = vsel %vm685_vm5, %v5106_v43, 0  ;;  %v4061_v43 = vld [vmem:[%s5633_s16 + $0x24] sm:$0x3]  ;;  %v2934_v30 = vsel %vm685_vm5, %v2928_v25, 0  ;;  %v3779_v25 = vsub.s32 0, %v4936_v19 }
 0x15f   : > { %v2927_v23 = vpop.permute.xlu0 %2926 }
 0x160   : > { %v2940_v27 = vsel %vm685_vm5, %v2927_v23, 0 }
 0x165   : > { %4220 = vmatmul.mubr.msk.bf16.vlgmr.msra.gmra.mrb[0].mxu1 %vm681_vm7, %v4029_v28 }
 0x166   : > { %4224 = vmatpush3.bf16.msra.mxu1 %v1971_v29  ;;  %4225 = vmatprep.mubr.msk.bf16.mxu1 %vm4732_vm4, %v4730_v8  ;;  %v3033_v29 = vpop.permute.xlu1 %3032 }
 0x167   : > { %4031 = vmatmul.mubr.msk.bf16.vlgmr.msra.gmra.mrb[0].mxu0 %vm681_vm7, %v4029_v28  ;;  %4229 = vmatprep.subr.bf16.mxu1 %v4730_v8  ;;  %v3031_v28 = vpop.permute.xlu0 %3030  ;;  %v3046_v35 = vsel %vm685_vm5, %v3033_v29, 0 }
 0x168   : > { %1974 = vmatpush1.bf16.msra.mxu0 %v1965_v32  ;;  %2005 = vmatprep.mubr.bf16.mxu0 %v4733_v9  ;;  %v3035_v31 = vsel %vm877_vm8, %v3031_v28, %v3033_v29 }
 0x169   : > { %4038 = vmatprep.subr.msk.bf16.mxu0 %vm685_vm5, %v2066_v33  ;;  %v3034_v33 = vsel %vm877_vm8, %v3029_v59, %v3031_v28  ;;  %v3787_v59 = vsub.s32 2, %v4936_v19 }
 0x16a   : > { %v3040_v38 = vsel %vm685_vm5, %v3034_v33, 0 }
 0x16b   : > { %v3135_v32 = vpop.permute.xlu0 %3134 }
 0x171   : > { %4226 = vmatmul.mubr.msk.bf16.vlgmr.msra.gmra.mrb[0].mxu1 %vm681_vm7, %v4033_v36 }
 0x172   : > { %4230 = vmatpush3.bf16.msra.mxu1 %v2077_v37  ;;  %4231 = vmatprep.mubr.msk.bf16.mxu1 %vm4732_vm4, %v4730_v8  ;;  %v3139_v37 = vpop.permute.xlu0 %3138 }
 0x173   : > { %4035 = vmatmul.mubr.msk.bf16.vlgmr.msra.gmra.mrb[0].mxu0 %vm681_vm7, %v4033_v36  ;;  %4235 = vmatprep.subr.bf16.mxu1 %v4730_v8  ;;  %v3137_v36 = vpop.permute.xlu1 %3136  ;;  %v3152_v44 = vsel %vm685_vm5, %v3139_v37, 0 }
 0x174   : > { %2080 = vmatpush1.bf16.msra.mxu0 %v2071_v40  ;;  %2111 = vmatprep.mubr.bf16.mxu0 %v4733_v9  ;;  %v3141_v39 = vsel %vm984_vm9, %v3137_v36, %v3139_v37 }
 0x175   : > { %4042 = vmatprep.subr.msk.bf16.mxu0 %vm685_vm5, %v2172_v41  ;;  %v3140_v41 = vsel %vm984_vm9, %v3135_v32, %v3137_v36 }
 0x176   : > { %v3146_v26 = vsel %vm685_vm5, %v3140_v41, 0 }
 0x177   : > { %v3241_v40 = vpop.permute.xlu1 %3240 }
 0x17d   : > { %4232 = vmatmul.mubr.msk.bf16.vlgmr.msra.gmra.mrb[0].mxu1 %vm681_vm7, %v4037_v45 }
 0x17e   : > { %4236 = vmatpush3.bf16.msra.mxu1 %v2183_v46  ;;  %4237 = vmatprep.mubr.msk.bf16.mxu1 %vm4732_vm4, %v4730_v8  ;;  %v3245_v46 = vpop.permute.xlu1 %3244 }
 0x17f   : > { %4039 = vmatmul.mubr.msk.bf16.vlgmr.msra.gmra.mrb[0].mxu0 %vm681_vm7, %v4037_v45  ;;  %4241 = vmatprep.subr.bf16.mxu1 %v4730_v8  ;;  %v3243_v45 = vpop.permute.xlu0 %3242  ;;  %v3258_v51 = vsel %vm685_vm5, %v3245_v46, 0 }
 0x180   : > { %2186 = vmatpush1.bf16.msra.mxu0 %v2177_v48  ;;  %2217 = vmatprep.mubr.bf16.mxu0 %v4733_v9  ;;  %v3247_v47 = vsel %vm1091_vm10, %v3243_v45, %v3245_v46 }
 0x181   : > { %4046 = vmatprep.subr.msk.bf16.mxu0 %vm685_vm5, %v2278_v49  ;;  %v3246_v49 = vsel %vm1091_vm10, %v3241_v40, %v3243_v45 }
 0x182   : > { %v3252_v55 = vsel %vm685_vm5, %v3246_v49, 0 }
 0x183   : > { %v3347_v48 = vpop.permute.xlu0 %3346 }
 0x189   : > { %4238 = vmatmul.mubr.msk.bf16.vlgmr.msra.gmra.mrb[0].mxu1 %vm681_vm7, %v4041_v52 }
 0x18a   : > { %4242 = vmatpush3.bf16.msra.mxu1 %v2289_v53  ;;  %4243 = vmatprep.mubr.msk.bf16.mxu1 %vm4732_vm4, %v4730_v8  ;;  %v3351_v53 = vpop.permute.xlu0 %3350 }
 0x18b   : > { %4043 = vmatmul.mubr.msk.bf16.vlgmr.msra.gmra.mrb[0].mxu0 %vm681_vm7, %v4041_v52  ;;  %4247 = vmatprep.subr.bf16.mxu1 %v4730_v8  ;;  %v3349_v52 = vpop.permute.xlu1 %3348  ;;  %v3364_v62 = vsel %vm685_vm5, %v3351_v53, 0 }
 0x18c   : > { %2292 = vmatpush1.bf16.msra.mxu0 %v2283_v57  ;;  %2323 = vmatprep.mubr.bf16.mxu0 %v4733_v9  ;;  %v3353_v56 = vsel %vm1198_vm11, %v3349_v52, %v3351_v53 }
 0x18d   : > { %4050 = vmatprep.subr.msk.bf16.mxu0 %vm685_vm5, %v2384_v58  ;;  %v3352_v58 = vsel %vm1198_vm11, %v3347_v48, %v3349_v52 }
 0x18e   : > { %v3358_v4 = vsel %vm685_vm5, %v3352_v58, 0 }
 0x18f   : > { %v3453_v57 = vpop.permute.xlu1 %3452 }
 0x195   : > { %4244 = vmatmul.mubr.msk.bf16.vlgmr.msra.gmra.mrb[0].mxu1 %vm681_vm7, %v4045_v2 }
 0x196   : > { %4248 = vmatpush3.bf16.msra.mxu1 %v2395_v3  ;;  %4249 = vmatprep.mubr.msk.bf16.mxu1 %vm4732_vm4, %v4730_v8  ;;  %v3457_v3 = vpop.permute.xlu1 %3456 }
 0x197   : > { %4047 = vmatmul.mubr.msk.bf16.vlgmr.msra.gmra.mrb[0].mxu0 %vm681_vm7, %v4045_v2  ;;  %4253 = vmatprep.subr.bf16.mxu1 %v4730_v8  ;;  %v3455_v2 = vpop.permute.xlu0 %3454  ;;  %v3470_v13 = vsel %vm685_vm5, %v3457_v3, 0 }
 0x198   : > { %2398 = vmatpush1.bf16.msra.mxu0 %v2389_v10  ;;  %2429 = vmatprep.mubr.bf16.mxu0 %v4733_v9  ;;  %v3459_v6 = vsel %vm1305_vm12, %v3455_v2, %v3457_v3 }
 0x199   : > { %4054 = vmatprep.subr.msk.bf16.mxu0 %vm685_vm5, %v2490_v11  ;;  %v3458_v11 = vsel %vm1305_vm12, %v3453_v57, %v3455_v2 }
 0x19a   : > { %v3464_v5 = vsel %vm685_vm5, %v3458_v11, 0 }
 0x19b   : > { %v3559_v10 = vpop.permute.xlu0 %3558 }
 0x1a1   : > { %4250 = vmatmul.mubr.msk.bf16.vlgmr.msra.gmra.mrb[0].mxu1 %vm681_vm7, %v4049_v14 }
 0x1a2   : > { %4254 = vmatpush3.bf16.msra.mxu1 %v2501_v15  ;;  %4255 = vmatprep.mubr.msk.bf16.mxu1 %vm4732_vm4, %v4730_v8  ;;  %v3563_v15 = vpop.permute.xlu0 %3562 }
 0x1a3   : > { %4051 = vmatmul.mubr.msk.bf16.vlgmr.msra.gmra.mrb[0].mxu0 %vm681_vm7, %v4049_v14  ;;  %4259 = vmatprep.subr.bf16.mxu1 %v4730_v8  ;;  %v3561_v14 = vpop.permute.xlu1 %3560 }
 0x1a4   : > { %2504 = vmatpush1.bf16.msra.mxu0 %v2495_v7  ;;  %2535 = vmatprep.mubr.bf16.mxu0 %v4733_v9  ;;  %v3565_v16 = vsel %vm1412_vm13, %v3561_v14, %v3563_v15 }
 0x1a5   : > { %4058 = vmatprep.subr.msk.bf16.mxu0 %vm685_vm5, %v2596_v63  ;;  %v3564_v63 = vsel %vm1412_vm13, %v3559_v10, %v3561_v14 }
 0x1a6   : > { %v3570_v60 = vsel %vm685_vm5, %v3564_v63, 0 }
 0x1a7   : > { %v3665_v7 = vpop.permute.xlu1 %3664 }
 0x1ad   : > { %4256 = vmatmul.mubr.msk.bf16.vlgmr.msra.gmra.mrb[0].mxu1 %vm681_vm7, %v4053_v0 }
 0x1ae   : > { %4260 = vmatpush3.bf16.msra.mxu1 %v2607_v1  ;;  %4261 = vmatprep.mubr.msk.bf16.mxu1 %vm4732_vm4, %v4730_v8  ;;  %v3667_v1 = vpop.permute.xlu0 %3666 }
 0x1af   : > { %4055 = vmatmul.mubr.msk.bf16.vlgmr.msra.gmra.mrb[0].mxu0 %vm681_vm7, %v4053_v0  ;;  %4265 = vmatprep.subr.bf16.mxu1 %v4730_v8  ;;  %v3576_v0 = vsel %vm685_vm5, %v3563_v15, 0 }
 0x1b0   : > { %2610 = vmatpush1.bf16.msra.mxu0 %v2601_v18  ;;  %2641 = vmatprep.mubr.bf16.mxu0 %v4733_v9  ;;  %v3669_v18 = vpop.permute.xlu1 %3668 }
 0x1b1   : > { %4066 = vmatprep.subr.msk.bf16.mxu0 %vm685_vm5, %v5113_v54  ;;  %v2929_v54 = vsel %vm678_vm6, %v2925_v22, %v2927_v23  ;;  %v4093_v22 = vld [vmem:[%s5633_s16 + $0x32] sm:$0x3]  ;;  %v3682_v23 = vsel %vm685_vm5, %v3669_v18, 0 }
 0x1b9   : > { %4262 = vmatmul.mubr.msk.bf16.vlgmr.msra.gmra.mrb[0].mxu1 %vm681_vm7, %v4057_v20 }
 0x1ba   : > { %4266 = vmatpush3.bf16.msra.mxu1 %v2834_v21  ;;  %4267 = vmatprep.mubr.msk.bf16.mxu1 %vm4732_vm4, %v4730_v8  ;;  %v3670_v21 = vsel %vm1519_vm14, %v3665_v7, %v3667_v1 }
 0x1bb   : > { %4059 = vmatmul.mubr.msk.bf16.vlgmr.msra.gmra.mrb[0].mxu0 %vm681_vm7, %v4057_v20  ;;  %4271 = vmatprep.subr.bf16.mxu1 %v4730_v8  ;;  %v3671_v20 = vsel %vm1519_vm14, %v3667_v1, %v3669_v18 }
 0x1bc   : > { %2837 = vmatpush1.bf16.msra.mxu0 %v2828_v24  ;;  %2868 = vmatprep.mubr.bf16.mxu0 %v4733_v9  ;;  %v3676_v24 = vsel %vm685_vm5, %v3670_v21, 0 }
 0x1bd   : > { %4070 = vmatprep.subr.msk.bf16.mxu0 %vm685_vm5, %v2929_v54  ;;  %v4097_v54 = vld [vmem:[%s5633_s16 + $0x34] sm:$0x3] }
 0x1c5   : > { %4268 = vmatmul.mubr.msk.bf16.vlgmr.msra.gmra.mrb[0].mxu1 %vm681_vm7, %v4061_v43 }
 0x1c6   : > { %4272 = vmatpush3.bf16.msra.mxu1 %v2940_v27  ;;  %4273 = vmatprep.mubr.msk.bf16.mxu1 %vm4732_vm4, %v4730_v8 }
 0x1c7   : > { %4067 = vmatmul.mubr.msk.bf16.vlgmr.msra.gmra.mrb[0].mxu0 %vm681_vm7, %v4061_v43  ;;  %4277 = vmatprep.subr.bf16.mxu1 %v4730_v8  ;;  %v3783_v43 = vsub.s32 1, %v4936_v19 }
 0x1c8   : > { %2943 = vmatpush1.bf16.msra.mxu0 %v2934_v30  ;;  %2974 = vmatprep.mubr.bf16.mxu0 %v4733_v9 }
 0x1c9   : > { %4074 = vmatprep.subr.msk.bf16.mxu0 %vm685_vm5, %v3035_v31 }
 0x1d1   : > { %4274 = vmatmul.mubr.msk.bf16.vlgmr.msra.gmra.mrb[0].mxu1 %vm681_vm7, %v4069_v34 }
 0x1d2   : > { %4278 = vmatpush3.bf16.msra.mxu1 %v3046_v35  ;;  %4279 = vmatprep.mubr.msk.bf16.mxu1 %vm4732_vm4, %v4730_v8 }
 0x1d3   : > { %4071 = vmatmul.mubr.msk.bf16.vlgmr.msra.gmra.mrb[0].mxu0 %vm681_vm7, %v4069_v34  ;;  %4283 = vmatprep.subr.bf16.mxu1 %v4730_v8 }
 0x1d4   : > { %3049 = vmatpush1.bf16.msra.mxu0 %v3040_v38  ;;  %3080 = vmatprep.mubr.bf16.mxu0 %v4733_v9 }
 0x1d5   : > { %4078 = vmatprep.subr.msk.bf16.mxu0 %vm685_vm5, %v3141_v39 }
 0x1dd   : > { %4280 = vmatmul.mubr.msk.bf16.vlgmr.msra.gmra.mrb[0].mxu1 %vm681_vm7, %v4073_v42 }
 0x1de   : > { %4284 = vmatpush3.bf16.msra.mxu1 %v3152_v44  ;;  %4285 = vmatprep.mubr.msk.bf16.mxu1 %vm4732_vm4, %v4730_v8 }
 0x1df   : > { %4075 = vmatmul.mubr.msk.bf16.vlgmr.msra.gmra.mrb[0].mxu0 %vm681_vm7, %v4073_v42  ;;  %4289 = vmatprep.subr.bf16.mxu1 %v4730_v8 }
 0x1e0   : > { %3155 = vmatpush1.bf16.msra.mxu0 %v3146_v26  ;;  %3186 = vmatprep.mubr.bf16.mxu0 %v4733_v9 }
 0x1e1   : > { %4082 = vmatprep.subr.msk.bf16.mxu0 %vm685_vm5, %v3247_v47 }
 0x1e9   : > { %4286 = vmatmul.mubr.msk.bf16.vlgmr.msra.gmra.mrb[0].mxu1 %vm681_vm7, %v4077_v50 }
 0x1ea   : > { %4290 = vmatpush3.bf16.msra.mxu1 %v3258_v51  ;;  %4291 = vmatprep.mubr.msk.bf16.mxu1 %vm4732_vm4, %v4730_v8 }
 0x1eb   : > { %4079 = vmatmul.mubr.msk.bf16.vlgmr.msra.gmra.mrb[0].mxu0 %vm681_vm7, %v4077_v50  ;;  %4295 = vmatprep.subr.bf16.mxu1 %v4730_v8 }
 0x1ec   : > { %3261 = vmatpush1.bf16.msra.mxu0 %v3252_v55  ;;  %3292 = vmatprep.mubr.bf16.mxu0 %v4733_v9 }
 0x1ed   : > { %4086 = vmatprep.subr.msk.bf16.mxu0 %vm685_vm5, %v3353_v56  ;;  %v3807_v56 = vld [vmem:[%s5636_s12] sm:$0xf] }
 0x1f5   : > { %4292 = vmatmul.mubr.msk.bf16.vlgmr.msra.gmra.mrb[0].mxu1 %vm681_vm7, %v4081_v61 }
 0x1f6   : > { %4296 = vmatpush3.bf16.msra.mxu1 %v3364_v62  ;;  %4297 = vmatprep.mubr.msk.bf16.mxu1 %vm4732_vm4, %v4730_v8 }
 0x1f7   : > { %4083 = vmatmul.mubr.msk.bf16.vlgmr.msra.gmra.mrb[0].mxu0 %vm681_vm7, %v4081_v61  ;;  %4301 = vmatprep.subr.bf16.mxu1 %v4730_v8 }
 0x1f8   : > { %3367 = vmatpush1.bf16.msra.mxu0 %v3358_v4  ;;  %3398 = vmatprep.mubr.bf16.mxu0 %v4733_v9 }
 0x1f9   : > { %4090 = vmatprep.subr.msk.bf16.mxu0 %vm685_vm5, %v3459_v6 }
 0x201   : > { %4298 = vmatmul.mubr.msk.bf16.vlgmr.msra.gmra.mrb[0].mxu1 %vm681_vm7, %v4085_v12 }
 0x202   : > { %4302 = vmatpush3.bf16.msra.mxu1 %v3470_v13  ;;  %4303 = vmatprep.mubr.msk.bf16.mxu1 %vm4732_vm4, %v4730_v8 }
 0x203   : > { %4087 = vmatmul.mubr.msk.bf16.vlgmr.msra.gmra.mrb[0].mxu0 %vm681_vm7, %v4085_v12  ;;  %4307 = vmatprep.subr.bf16.mxu1 %v4730_v8 }
 0x204   : > { %3473 = vmatpush1.bf16.msra.mxu0 %v3464_v5  ;;  %3504 = vmatprep.mubr.bf16.mxu0 %v4733_v9 }
 0x205   : > { %4094 = vmatprep.subr.msk.bf16.mxu0 %vm685_vm5, %v3565_v16 }
 0x20d   : > { %4304 = vmatmul.mubr.msk.bf16.vlgmr.msra.gmra.mrb[0].mxu1 %vm681_vm7, %v4089_v17 }
 0x20e   : > { %4308 = vmatpush3.bf16.msra.mxu1 %v3576_v0  ;;  %4309 = vmatprep.mubr.msk.bf16.mxu1 %vm4732_vm4, %v4730_v8 }
 0x20f   : > { %4091 = vmatmul.mubr.msk.bf16.vlgmr.msra.gmra.mrb[0].mxu0 %vm681_vm7, %v4089_v17  ;;  %4313 = vmatprep.subr.bf16.mxu1 %v4730_v8 }
 0x210   : > { %3579 = vmatpush1.bf16.msra.mxu0 %v3570_v60  ;;  %3610 = vmatprep.mubr.bf16.mxu0 %v4733_v9 }
 0x211   : > { %4098 = vmatprep.subr.msk.bf16.mxu0 %vm685_vm5, %v3671_v20 }
 0x219   : > { %4310 = vmatmul.mubr.msk.bf16.vlgmr.msra.gmra.mrb[0].mxu1 %vm681_vm7, %v4093_v22 }
 0x21a   : > { %4314 = vmatpush3.bf16.msra.mxu1 %v3682_v23  ;;  %4315 = vmatprep.mubr.msk.bf16.mxu1 %vm4732_vm4, %v4730_v8  ;;  %v3775_v8 = vld [vmem:[%s5634_s19] sm:$0x7] }
 0x21b   : > { %4095 = vmatmul.mubr.msk.bf16.vlgmr.msra.gmra.mrb[0].mxu0 %vm681_vm7, %v4093_v22  ;;  %v3780_v27 = vrot.slane %v3775_v8, %v3779_v25  ;;  %v3784_v29 = vrot.slane %v3775_v8, %v3783_v43 }
 0x21c   : > { %3685 = vmatpush1.bf16.msra.mxu0 %v3676_v24  ;;  %3716 = vmatprep.mubr.bf16.mxu0 %v4733_v9  ;;  %v3788_v9 = vrot.slane %v3775_v8, %v3787_v59 }
 0x225   : > { %4316 = vmatmul.mubr.msk.bf16.vlgmr.msra.gmra.mrb[0].mxu1 %vm681_vm7, %v4097_v54 }
 0x227   : > { %4099 = vmatmul.mubr.msk.bf16.vlgmr.msra.gmra.mrb[0].mxu0 %vm681_vm7, %v4097_v54 }
 0x2f8   : > { %v3759_v28 = vpop.f32.mrb[0].mxu1 }
 0x2f9   : > { %3774 = vst.msk [vmem:[%s4924_s28 + $0x8] sm:$0xf] %vm3773_vm15, %v3759_v28  ;;  %v4317_v30 = vpop.f32.mrb[1].mxu1  ;;  %v3794_v31 = vmul.f32 %v3788_v9, %v3759_v28 }
 0x2fa   : > { %v3762_v32 = vpop.f32.mrb[2].mxu1  ;;  %v3718_v33 = vpop.f32.mrb[0].mxu0 }
 0x2fb   : > { %v3792_v34 = vmul.f32 %v3780_v27, %v3718_v33  ;;  %v4318_v35 = vpop.f32.mrb[3].mxu1  ;;  %v3720_v36 = vpop.f32.mrb[1].mxu0  ;;  %v3810_v42 = vmul.f32 %v3794_v31, %v3794_v31  ;;  %v3800_v47 = vsel %vm3773_vm15, %v3794_v31, 0.0 }
 0x2fc   : > { %v3770_v37 = vcombine.low %v3718_v33, %v3720_v36  ;;  %v3793_v38 = vmul.f32 %v3784_v29, %v3720_v36  ;;  %v3722_v39 = vpop.f32.mrb[2].mxu0 }
 0x2fd   : > { %v3797_v19 = vsel %vm3796_vm0, %v3792_v34, 0.0  ;;  %v3808_v40 = vmul.f32 %v3792_v34, %v3792_v34  ;;  %v3723_v41 = vpop.f32.mrb[3].mxu0  ;;  %v3814_v51 = vsel %vm3773_vm15, %v3810_v42, 0.0 }
 0x2fe   : > { %3772 = vst [vmem:[%s4924_s28] sm:$0xff] %v3770_v37  ;;  %v3798_v44 = vsel %vm3796_vm0, %v3793_v38, 0.0  ;;  %v3809_v45 = vmul.f32 %v3793_v38, %v3793_v38  ;;  %s5635_s28 = sld [smem:[#allocation11_spill]] }
 0x2ff   : > { %v3799_v46 = vadd.f32 %v3798_v44, %v3797_v19  ;;  %v3811_v26 = vsel %vm3796_vm0, %v3808_v40, 0.0 }
 0x300   : > { %v3812_v48 = vsel %vm3796_vm0, %v3809_v45, 0.0 }
 0x301   : > { %v3801_v49 = vadd.f32 %v3800_v47, %v3799_v46  ;;  %v3813_v50 = vadd.f32 %v3812_v48, %v3811_v26 }
 0x303   : > { %3802 = vadd.xlane.f32.xlu0 %v3801_v49  ;;  %v3815_v52 = vadd.f32 %v3814_v51, %v3813_v50 }
 0x304   : > { %v3795_v53 = vld [vmem:[%s5635_s28] sm:$0xf] }
 0x305   : > { %3816 = vadd.xlane.f32.xlu1 %v3815_v52 }
 0x390   : > { %v3803_v55 = vpop.xlane.xlu0 %3802 }
 0x391   : > { %v3804_v57 = vadd.f32 %v3803_v55, %v3795_v53 }
 0x392   : > { %v3817_v58 = vpop.xlane.xlu1 %3816 }
 0x393   : > { %3806 = vst.msk [vmem:[%s5635_s28] sm:$0xf] %vm3805_vm1, %v3804_v57  ;;  %v3818_v61 = vadd.f32 %v3817_v58, %v3807_v56 }
 0x395   : > { %3819 = vst.msk [vmem:[%s5636_s12] sm:$0xf] %vm3805_vm1, %v3818_v61 }
 0x396 PF: > { %s18_s11 = sadd.s32 1, %s4724_s11   ;;  %s5637_s18 = sld [smem:[#allocation6_spill]] }
 0x397   : > { %p15_p7 = scmp.ge.s32.totalorder %s18_s11, 18   ;;  %s5638_s24 = smov %s4688_s25 }
 0x398   : > { %s5639_s25 = smov %s4877_s13  ;;  %s5640_s26 = smov %s4696_s27 }
 0x399   : > { %s5641_s27 = smov %s4871_s6  ;;  %s5642_s28 = smov %s4704_s29 }
 0x39a   : > { %s5643_s29 = smov %s4868_s7  ;;  %s5644_s30 = smov %s4716_s9 }
 0x39b   : > { %s5645_s8 = smov %s4720_s10  ;;  %s5646_s9 = smov %s4840_s15 }
 0x39c   : > { %s5647_s10 = smov %s5637_s18  ;;  %17 = sbr.rel (!%p15_p7) target bundleno = 13 (0xd), region = 260 }

// kernel: residual_block_pallas.7
= control target key start
LH: loop header
LB: loop body
LE: loop exit
PB: predicated region body
PF: predicated region fallthrough
CT: control target
= control target key end

     0   :  { %s712_s15 = smov 0   ;;  %s714_s16 = smov 0   ;;  %s825_s0 = inlined_call_operand.vmem [shape: f32[2,8,4,324], index: 0, kind: input, shape index: {}]   ;;  %s826_s1 = inlined_call_operand.vmem [shape: f32[2,4,8,1,324], index: 1, kind: input, shape index: {}]   ;;  %s827_s2 = inlined_call_operand.vmem [shape: f32[4,1], index: 2, kind: input, shape index: {}]   ;;  %s828_s3 = inlined_call_operand.vmem [shape: f32[4,1], index: 3, kind: input, shape index: {}]   ;;  %s829_s4 = inlined_call_operand.vmem [shape: f32[2,4,8,1,324], index: 4, kind: output, shape index: {}]  }
   0x1   :  { %s716_s17 = smov 0   ;;  %s718_s18 = smov 0  }
   0x2   :  { %s720_s19 = smov 0   ;;  %s722_s20 = smov 0  }
   0x3   :  { %s724_s21 = smov 0  }
   0x4 LB: > { %s23_s22 = sadd.s32 1, %s674_s19  ;;  %s26_s23 = sadd.s32 1, %s678_s20  ;;  %s682_s21 = sphi %s724_s21, %s14_s21   ;;  %s678_s20 = sphi %s722_s20, %s836_s20   ;;  %s674_s19 = sphi %s720_s19, %s835_s19   ;;  %s670_s18 = sphi %s718_s18, %s834_s18   ;;  %s666_s17 = sphi %s716_s17, %s833_s17   ;;  %s662_s16 = sphi %s714_s16, %s832_s16   ;;  %s658_s15 = sphi %s712_s15, %s831_s15  }
   0x5   : > { %p24_p0 = scmp.ge.s32.totalorder %s23_s22, 8  ;;  %s552_s24 = sadd.s32 4294967295, %s682_s21  }
   0x6   : > { %p70_p1 = scmp.ne.s32.totalorder %s662_s16, %s658_s15  ;;  %p71_p2 = scmp.eq.s32.totalorder %s682_s21, 0 }
   0x7   : > { %s838_s22 = smov (%p24_p0, %s23_s22), 0  ;;  %s840_s23 = smov (!%p24_p0, %s26_s23), %s678_s20 }
   0x8   : > { %p28_p3 = scmp.ge.s32.totalorder %s840_s23, 2  ;;  %p144_p4 = scmp.eq.s32.totalorder %s552_s24, 15 }
   0x9   : > { %s59_s25 = ssub.s32 %s674_s19, %s838_s22  ;;  %p72_p5 = por %p71_p2, %p70_p1 }
   0xa   : > { %s842_s23 = smov (%p28_p3, %s840_s23), 0  ;;  %p760_p6 = por %p144_p4, %p70_p1 }
   0xb   : > { %s58_s27 = ssub.s32 %s678_s20, %s842_s23  ;;  %s63_s29 = sadd.s32 1, %s662_s16 }
   0xc   : > { %s60_s28 = sor.u32 %s59_s25, %s58_s27  ;;  %p555_p8 = scmp.ge.s32.totalorder %s682_s21, 16 }
   0xd   : > { %p61_p7 = scmp.eq.s32.totalorder %s60_s28, 0 }
   0xe   : > { %172 = sbr.rel (%p555_p8) target bundleno = 31 (0x1f), region = 24 }
   0xf   : > { %s768_s30 = scalar_select %p61_p7, %s662_s16, %s63_s29  }
  0x15   : > { %187 = sbr.rel (!%p72_p5) target bundleno = 31 (0x1f), region = 32  ;;  %s189_s5 = sand.u32 (%p72_p5), 1, %s662_s16  }
  0x16   : > { %s561_s6 = smul.u32 (%p72_p5), 3, %s674_s19 }
  0x17   : > { %s560_s7 = smul.u32 (%p72_p5), 12, %s189_s5 }
  0x18   : > { %s562_s8 = smul.u32 (%p72_p5), 96, %s678_s20 }
  0x19   : > { %s191_s13 = scalar_lea.vmem (%p72_p5), [#allocation2], %s560_s7 }
  0x1a   : > { %s194_s9 = sadd.s32 (%p72_p5), %s562_s8, %s561_s6 }
  0x1b   : > { %s195_s12 = scalar_lea.vmem (%p72_p5), %s826_s1, %s194_s9 }
  0x1c   : > { %v211_v0 = vld [vmem:[%s195_s12] sm:$0x7]  ;;  %v213_v1 = vld [vmem:[%s195_s12 + $0x18] sm:$0x7]  ;;  %v215_v2 = vld [vmem:[%s195_s12 + $0x30] sm:$0x7] }
  0x1d   : > { %212 = vst [vmem:[%s191_s13] sm:$0x7] %v211_v0  ;;  %214 = vst [vmem:[%s191_s13 + $0x3] sm:$0x7] %v213_v1  ;;  %v217_v3 = vld [vmem:[%s195_s12 + $0x48] sm:$0x7] }
  0x1e   : > { %216 = vst [vmem:[%s191_s13 + $0x6] sm:$0x7] %v215_v2  ;;  %218 = vst [vmem:[%s191_s13 + $0x9] sm:$0x7] %v217_v3 }
  0x1f PF: > { %p556_p9 = scmp.ge.s32.totalorder %s682_s21, 1  ;;  %p248_p10 = scmp.lt.s32.totalorder %s682_s21, 17 }
  0x21   : > { %p249_p11 = pnand %p556_p9, %p248_p10 }
  0x22   : > { %v303_v4 = vld [vmem:[%s827_s2] sm:$0xf] (!%p249_p11)  ;;  %v684_v5 = vmov (!%p249_p11), 0   ;;  %p288_p12 = scmp.lt.s32.totalorder (!%p249_p11), %s670_s18, 1  ;;  %p290_p13 = scmp.lt.s32.totalorder (!%p249_p11), %s666_s17, 7  ;;  %v311_v9 = vlaneseq (!%p249_p11) }
  0x23   : > { %252 = sbr.rel (%p249_p11) target bundleno = 189 (0xbd), region = 73  ;;  %627 = vset.pattern.permute.xlu0 (!%p249_p11), %v684_v5  ;;  %v360_v6 = vld [vmem:[%s828_s3] sm:$0xf] (!%p249_p11)  ;;  %v685_v7 = vmov (!%p249_p11), 839922192   ;;  %s255_s12 = sand.u32 (!%p249_p11), 1, %s658_s15  }
  0x24   : > { %306 = vperm.xlu0 (!%p249_p11), %627, %v303_v4   ;;  %v309_v8 = vunpack.c.l.s4 (!%p249_p11), %v685_v7  ;;  %v312_v11 = vshrl.u32 (!%p249_p11), %v311_v9, 7  ;;  %v686_v12 = vmov (!%p249_p11), 1966171168   ;;  %s793_s13 = smul.u32 (!%p249_p11), 12, %s255_s12  ;;  %vm391_vm0 = vcmp.lt.s32.totalorder (!%p249_p11), %v311_v9, 324 }
  0x25   : > { %v321_v13 = vunpack.c.l.s4 (!%p249_p11), %v686_v12 }
  0x26   : > { %v310_v10 = vunpack.c.0.s8 (!%p249_p11), %v309_v8  ;;  %v367_v25 = vsub.s32 (!%p249_p11), 0, %v312_v11  ;;  %v371_v26 = vsub.s32 (!%p249_p11), 1, %v312_v11  ;;  %v375_v30 = vsub.s32 (!%p249_p11), 2, %v312_v11  ;;  %s257_s15 = scalar_lea.vmem (!%p249_p11), [#allocation2], %s793_s13  ;;  %s287_s14 = scalar_lea.vmem (!%p249_p11), [#allocation3], %s793_s13 }
  0x27   : > { %v322_v15 = vunpack.c.0.s8 (!%p249_p11), %v321_v13  ;;  %v379_v31 = vsub.s32 (!%p249_p11), 3, %v312_v11  ;;  %v299_v32 = vld [vmem:[%s257_s15] sm:$0x7] (!%p249_p11)  ;;  %v300_v33 = vld [vmem:[%s257_s15 + $0x3] sm:$0x7] (!%p249_p11) }
  0x28   : > { %363 = vperm.xlu0 (!%p249_p11), %627, %v360_v6   ;;  %v313_v14 = vsub.s32 (!%p249_p11), %v310_v10, %v312_v11  ;;  %v301_v36 = vld [vmem:[%s257_s15 + $0x6] sm:$0x7] (!%p249_p11)  ;;  %v302_v37 = vld [vmem:[%s257_s15 + $0x9] sm:$0x7] (!%p249_p11) }
  0x29   : > { %v325_v19 = vsub.s32 (!%p249_p11), %v322_v15, %v312_v11 }
  0x2a   : > { %s289_s28 = scalar_select %p288_p12, %s670_s18, 1 }
  0x2b   : > { %s291_s29 = scalar_select %p290_p13, %s666_s17, 7 }
  0x2c   : > { %s565_s5 = smul.u32 24, %s289_s28 }
  0x2d   : > { %s564_s6 = smul.u32 3, %s291_s29 }
  0x2e   : > { %s566_s24 = smul.u32 (%p760_p6), 3, %s666_s17 }
  0x2f   : > { %s294_s7 = sadd.s32 %s565_s5, %s564_s6  ;;  %s567_s25 = smul.u32 (%p760_p6), 96, %s670_s18 }
  0x30   : > { %s557_s8 = sshll.u32 %s294_s7, 2 }
  0x31   : > { %s296_s11 = scalar_lea.vmem %s825_s0, %s557_s8  ;;  %s406_s27 = sadd.s32 (%p760_p6), %s567_s25, %s566_s24 }
  0x32   : > { %v297_v17 = vld [vmem:[%s296_s11] sm:$0xff]  ;;  %v298_v18 = vld [vmem:[%s296_s11 + $0x8] sm:$0xf]  ;;  %s407_s5 = scalar_lea.vmem (%p760_p6), %s829_s4, %s406_s27 }
  0xa3   : > { %v307_v16 = vpop.permute.xlu0 %306 }
  0xa4   : > { %v314_v20 = vrot.slane %v307_v16, %v313_v14 }
  0xa6   : > { %v316_v21 = vmul.f32 %v314_v20, %v297_v17  ;;  %v317_v22 = vmul.f32 %v314_v20, %v298_v18 }
  0xa7   : > { %v364_v29 = vpop.permute.xlu0 %363 }
  0xa8   : > { %v326_v23 = vrot.slane %v316_v21, %v325_v19  ;;  %v333_v24 = vrot.slane %v317_v22, %v325_v19  ;;  %v368_v38 = vrot.slane %v364_v29, %v367_v25  ;;  %v372_v39 = vrot.slane %v364_v29, %v371_v26 }
  0xa9   : > { %v376_v44 = vrot.slane %v364_v29, %v375_v30  ;;  %v380_v45 = vrot.slane %v364_v29, %v379_v31 }
  0xaa   : > { %v334_v27 = vcombine.low %v326_v23, %v333_v24  ;;  %v335_v28 = vcombine.high %v326_v23, %v333_v24 }
  0xac   : > { %v342_v34 = vrot.slane %v334_v27, %v325_v19  ;;  %v349_v35 = vrot.slane %v335_v28, %v325_v19 }
  0xae   : > { %v350_v40 = vcombine.high %v342_v34, %v342_v34  ;;  %v351_v41 = vcombine.high %v349_v35, %v349_v35  ;;  %v356_v42 = vadd.f32 %v342_v34, %v299_v32  ;;  %v357_v43 = vadd.f32 %v349_v35, %v300_v33  ;;  %403 = sbr.rel (!%p760_p6) target bundleno = 189 (0xbd), region = 81 }
  0xb0   : > { %v358_v46 = vadd.f32 %v350_v40, %v301_v36  ;;  %v359_v47 = vadd.f32 %v351_v41, %v302_v37  ;;  %v385_v48 = vadd.f32 %v368_v38, %v356_v42  ;;  %v386_v49 = vadd.f32 %v372_v39, %v357_v43 }
  0xb2   : > { %v387_v50 = vadd.f32 %v376_v44, %v358_v46  ;;  %v388_v51 = vadd.f32 %v380_v45, %v359_v47  ;;  %393 = vst.msk [vmem:[%s287_s14] sm:$0x7] %vm391_vm0, %v385_v48  ;;  %394 = vst.msk [vmem:[%s287_s14 + $0x3] sm:$0x7] %vm391_vm0, %v386_v49 }
  0xb4   : > { %395 = vst.msk [vmem:[%s287_s14 + $0x6] sm:$0x7] %vm391_vm0, %v387_v50  ;;  %396 = vst.msk [vmem:[%s287_s14 + $0x9] sm:$0x7] %vm391_vm0, %v388_v51 }
  0xb9   : > { %v423_v52 = vld [vmem:[%s287_s14] sm:$0x7]  ;;  %v425_v53 = vld [vmem:[%s287_s14 + $0x3] sm:$0x7] }
  0xba   : > { %424 = vst [vmem:[%s407_s5] sm:$0x7] %v423_v52  ;;  %426 = vst [vmem:[%s407_s5 + $0x18] sm:$0x7] %v425_v53 }
  0xbb   : > { %v427_v54 = vld [vmem:[%s287_s14 + $0x6] sm:$0x7]  ;;  %v429_v55 = vld [vmem:[%s287_s14 + $0x9] sm:$0x7] }
  0xbc   : > { %428 = vst [vmem:[%s407_s5 + $0x30] sm:$0x7] %v427_v54  ;;  %430 = vst [vmem:[%s407_s5 + $0x48] sm:$0x7] %v429_v55 }
  0xbd PF: > { %s14_s21 = sadd.s32 1, %s682_s21   ;;  %s831_s15 = smov %s662_s16 }
  0xbe   : > { %p11_p0 = scmp.ge.s32.totalorder %s14_s21, 18   ;;  %s832_s16 = smov %s768_s30 }
  0xbf   : > { %s833_s17 = smov %s674_s19  ;;  %s834_s18 = smov %s678_s20 }
  0xc0   : > { %s835_s19 = smov %s838_s22  ;;  %s836_s20 = smov %s842_s23 }
  0xc1   :  { %13 = sbr.rel (!%p11_p0) target bundleno = 4 (0x4), region = 156 }

</bundles_post_ra>
